<compile_context>
chip_gen: v6e
topology: v6e:2x2x1
jax: 0.10.0
libtpu: 0.0.40
codegen_flags: <defaults>
</compile_context>

<pallas_src>
import functools

import jax
import jax.numpy as jnp
from jax.experimental import pallas as pl
from jax.experimental.pallas import tpu as pltpu

LAYER_DIMS = [(784, 530), (530, 410), (410, 290), (290, 150), (150, 10)]
IN_DIM = 784


def _round_up(x, m):
    return (x + m - 1) // m * m


# Lane-aligned (multiple-of-128) output dims per layer: [640, 512, 384, 256, 128]
OUT_PAD = [_round_up(o, 128) for _, o in LAYER_DIMS]
# Padded input dim per layer: layer 1 keeps K=784 (sublane-aligned, no K-pad).
IN_PAD = [IN_DIM] + OUT_PAD[:-1]


def _mlp_kernel(x_ref,
                w1_ref, b1_ref,
                w2_ref, b2_ref,
                w3_ref, b3_ref,
                w4_ref, b4_ref,
                w5_ref, b5_ref,
                o_ref):
    """Fused forward for one (TILE_B, 784) batch tile: 4x(Linear+ReLU) + Linear.

    Weights/biases are full (padded, bf16/f32) arrays resident in VMEM across
    all grid steps; intermediate activations never leave VMEM.  Matmuls run
    with bf16 operands and f32 accumulation; bias-add/ReLU are f32.
    """

    def layer(h_bf16, w_ref, b_ref):
        return jnp.dot(h_bf16, w_ref[...],
                       preferred_element_type=jnp.float32) + b_ref[...]

    h = x_ref[...]                                                  # bf16
    h = jnp.maximum(layer(h, w1_ref, b1_ref), 0.0).astype(jnp.bfloat16)
    h = jnp.maximum(layer(h, w2_ref, b2_ref), 0.0).astype(jnp.bfloat16)
    h = jnp.maximum(layer(h, w3_ref, b3_ref), 0.0).astype(jnp.bfloat16)
    h = jnp.maximum(layer(h, w4_ref, b4_ref), 0.0).astype(jnp.bfloat16)
    o_ref[...] = layer(h, w5_ref, b5_ref)                           # f32 logits


def prepare_params(params):
    """One-time prep: zero-pad to lane-aligned shapes, cast weights to bf16.

    params: list of 5 (w, b) pairs with w stored as (in_features, out_features)
    (transpose of torch's nn.Linear weight) and b of shape (out_features,) or
    (1, out_features).  Returns a flat tuple (w1, b1, ..., w5, b5).
    Zero padding is mathematically inert: padded columns get bias 0 and ReLU
    keeps them 0; padded input columns multiply zero weights.
    """
    flat = []
    for idx, (w, b) in enumerate(params):
        din, dout = LAYER_DIMS[idx]
        dinp, doutp = IN_PAD[idx], OUT_PAD[idx]
        w_pad = jnp.zeros((dinp, doutp), jnp.bfloat16).at[:din, :dout].set(
            w.astype(jnp.bfloat16))
        b_pad = jnp.zeros((1, doutp), jnp.float32).at[:, :dout].set(
            b.reshape(1, -1).astype(jnp.float32))
        flat.append(w_pad)
        flat.append(b_pad)
    return tuple(flat)


@functools.partial(jax.jit, static_argnames=("tile_b",))
def simple_linear_forward(x, padded_params, tile_b=512):
    """x: (N, 1, 28, 28) or anything reshapeable to (N, 784). Returns (N, 10).

    padded_params: output of prepare_params() (pre-padded, bf16 weights).
    """
    x2d = x.reshape(-1, IN_DIM)
    n = x2d.shape[0]

    # Batch tile: multiple of 8 sublanes (hard requirement), capped by the
    # rounded-up batch so a tiny batch doesn't waste a full 512-row tile.
    tb = _round_up(min(int(tile_b), _round_up(n, 8)), 8)
    n_pad = _round_up(n, tb)
    d_out_pad = OUT_PAD[-1]

    # Zero-pad batch rows; cast input to bf16 (halves per-step input DMA).
    x_pad = jnp.zeros((n_pad, IN_DIM), jnp.bfloat16).at[:n, :].set(
        x2d.astype(jnp.bfloat16))

    grid = (n_pad // tb,)

    in_specs = [pl.BlockSpec((tb, IN_DIM), lambda i: (i, 0))]
    for a in padded_params:
        # Constant index_map: grid-invariant, stays VMEM-resident.  Single
        # buffering (Buffered(1)) since re-fetching/double-buffering an
        # invariant block buys nothing and wastes VMEM.
        in_specs.append(pl.BlockSpec(a.shape, lambda i: (0, 0),
                                     pipeline_mode=pl.Buffered(1)))

    # Cost estimate (padded FLOPs) for XLA scheduling.
    flops = 2 * n_pad * sum(IN_PAD[i] * OUT_PAD[i] for i in range(len(LAYER_DIMS)))
    weight_bytes = sum(int(a.size) * a.dtype.itemsize for a in padded_params)
    bytes_accessed = n_pad * IN_DIM * 2 + weight_bytes + n_pad * d_out_pad * 4

    # VMEM budget derived from actual buffer sizes: weights once (Buffered(1)),
    # double-buffered input/output tiles, activation working set, + headroom.
    in_tile_bytes = 2 * tb * IN_DIM * 2          # bf16 input, double-buffered
    out_tile_bytes = 2 * tb * d_out_pad * 4      # f32 output, double-buffered
    act_bytes = 2 * tb * max(OUT_PAD) * (4 + 2)  # f32 + bf16 activation slabs
    vmem_budget = min(weight_bytes + in_tile_bytes + out_tile_bytes + act_bytes
                      + (8 << 20),
                      56 << 20)

    out_pad = pl.pallas_call(
        _mlp_kernel,
        out_shape=jax.ShapeDtypeStruct((n_pad, d_out_pad), jnp.float32),
        grid=grid,
        in_specs=in_specs,
        out_specs=pl.BlockSpec((tb, d_out_pad), lambda i: (i, 0)),
        compiler_params=pltpu.CompilerParams(
            dimension_semantics=("parallel",),
            vmem_limit_bytes=int(vmem_budget),
        ),
        cost_estimate=pl.CostEstimate(
            flops=flops, transcendentals=0, bytes_accessed=bytes_accessed),
    )(x_pad, *padded_params)

    return out_pad[:n, :10]


def init_params(key):
    """Deterministic init mirroring PyTorch nn.Linear defaults:
    U(-1/sqrt(fan_in), 1/sqrt(fan_in)) for both weight and bias.
    Weights are stored transposed: (in_features, out_features)."""
    params = []
    for (fan_in, fan_out) in LAYER_DIMS:
        key, kw, kb = jax.random.split(key, 3)
        bound = 1.0 / jnp.sqrt(fan_in)
        w = jax.random.uniform(kw, (fan_in, fan_out), jnp.float32, -bound, bound)
        b = jax.random.uniform(kb, (1, fan_out), jnp.float32, -bound, bound)
        params.append((w, b))
    return params


def reference_forward(x, params):
    """Plain-JAX f32 reference for correctness checking."""
    h = x.reshape(-1, IN_DIM).astype(jnp.float32)
    for i, (w, b) in enumerate(params):
        h = h @ w + b.reshape(1, -1)
        if i < len(params) - 1:
            h = jnp.maximum(h, 0.0)
    return h


if __name__ == "__main__":
    key = jax.random.PRNGKey(0)
    key_params, key_x, key_x2 = jax.random.split(key, 3)

    params = init_params(key_params)
    padded_params = prepare_params(params)   # one-time padding/bf16 cast

    # MNIST-like NCHW input: batch=8, 1 channel, 28x28 spatial.
    x = jax.random.normal(key_x, (8, 1, 28, 28), dtype=jnp.float32)
    out = jax.block_until_ready(simple_linear_forward(x, padded_params))
    ref = reference_forward(x, params)
    assert out.shape == (8, 10), out.shape
    # bf16 matmul operands => not bit-identical to f32 reference; ~1e-2 rel err.
    assert jnp.allclose(out, ref, atol=5e-2, rtol=5e-2), "mismatch vs reference"

    # Exercise grid > 1 and the non-tile-multiple tail-padding path.
    x_big = jax.random.normal(key_x2, (20, 1, 28, 28), dtype=jnp.float32)
    out_big = jax.block_until_ready(
        simple_linear_forward(x_big, padded_params, tile_b=8))
    ref_big = reference_forward(x_big, params)
    assert out_big.shape == (20, 10), out_big.shape
    assert jnp.allclose(out_big, ref_big, atol=5e-2, rtol=5e-2), "mismatch (big)"

    print("KERNEL_OK")
</pallas_src>

<mosaic_0001>
module attributes {stable_mosaic.version = 11 : i64} {
  func.func @_mlp_kernel(%arg0: i32, %arg1: memref<8x784xbf16, #tpu.memory_space<vmem>>, %arg2: memref<784x640xbf16, #tpu.memory_space<vmem>>, %arg3: memref<1x640xf32, #tpu.memory_space<vmem>>, %arg4: memref<640x512xbf16, #tpu.memory_space<vmem>>, %arg5: memref<1x512xf32, #tpu.memory_space<vmem>>, %arg6: memref<512x384xbf16, #tpu.memory_space<vmem>>, %arg7: memref<1x384xf32, #tpu.memory_space<vmem>>, %arg8: memref<384x256xbf16, #tpu.memory_space<vmem>>, %arg9: memref<1x256xf32, #tpu.memory_space<vmem>>, %arg10: memref<256x128xbf16, #tpu.memory_space<vmem>>, %arg11: memref<1x128xf32, #tpu.memory_space<vmem>>, %arg12: memref<8x128xf32, #tpu.memory_space<vmem>>) attributes {dimension_semantics = [#tpu.dimension_semantics<parallel>], iteration_bounds = array<i64: 1>, scalar_prefetch = 0 : i64, scratch_operands = 0 : i64, tpu.core_type = #tpu.core_type<tc>, window_params = [{transform_indices = @transform_0, window_bounds = array<i64: 8, 784>}, {pipeline_mode = #tpu.pipeline_mode<synchronous>, transform_indices = @transform_1, window_bounds = array<i64: 784, 640>}, {pipeline_mode = #tpu.pipeline_mode<synchronous>, transform_indices = @transform_2, window_bounds = array<i64: 1, 640>}, {pipeline_mode = #tpu.pipeline_mode<synchronous>, transform_indices = @transform_3, window_bounds = array<i64: 640, 512>}, {pipeline_mode = #tpu.pipeline_mode<synchronous>, transform_indices = @transform_4, window_bounds = array<i64: 1, 512>}, {pipeline_mode = #tpu.pipeline_mode<synchronous>, transform_indices = @transform_5, window_bounds = array<i64: 512, 384>}, {pipeline_mode = #tpu.pipeline_mode<synchronous>, transform_indices = @transform_6, window_bounds = array<i64: 1, 384>}, {pipeline_mode = #tpu.pipeline_mode<synchronous>, transform_indices = @transform_7, window_bounds = array<i64: 384, 256>}, {pipeline_mode = #tpu.pipeline_mode<synchronous>, transform_indices = @transform_8, window_bounds = array<i64: 1, 256>}, {pipeline_mode = #tpu.pipeline_mode<synchronous>, transform_indices = @transform_9, window_bounds = array<i64: 256, 128>}, {pipeline_mode = #tpu.pipeline_mode<synchronous>, transform_indices = @transform_10, window_bounds = array<i64: 1, 128>}, {transform_indices = @transform_11, window_bounds = array<i64: 8, 128>}]} {
    %c0 = arith.constant 0 : index
    %c0_0 = arith.constant 0 : index
    %0 = vector.load %arg1[%c0, %c0_0] : memref<8x784xbf16, #tpu.memory_space<vmem>>, vector<8x784xbf16>
    %c0_1 = arith.constant 0 : index
    %c0_2 = arith.constant 0 : index
    %1 = vector.load %arg2[%c0_1, %c0_2] : memref<784x640xbf16, #tpu.memory_space<vmem>>, vector<784x640xbf16>
    %cst = arith.constant dense<0.000000e+00> : vector<8x640xf32>
    %2 = tpu.matmul %0, %1, %cst {dimension_numbers = #tpu.dot_dimension_numbers<[1], [0], [0], [1], [0, 0, 1, 1], [], []>} : vector<8x784xbf16>, vector<784x640xbf16>, vector<8x640xf32> -> vector<8x640xf32>
    %c0_3 = arith.constant 0 : index
    %c0_4 = arith.constant 0 : index
    %3 = vector.load %arg3[%c0_3, %c0_4] : memref<1x640xf32, #tpu.memory_space<vmem>>, vector<1x640xf32>
    %4 = vector.broadcast %3 : vector<1x640xf32> to vector<8x640xf32>
    %5 = arith.addf %2, %4 : vector<8x640xf32>
    %cst_5 = arith.constant 0.000000e+00 : f32
    %6 = vector.broadcast %cst_5 : f32 to vector<8x640xf32>
    %7 = arith.maximumf %5, %6 : vector<8x640xf32>
    %8 = arith.truncf %7 : vector<8x640xf32> to vector<8x640xbf16>
    %c0_6 = arith.constant 0 : index
    %c0_7 = arith.constant 0 : index
    %9 = vector.load %arg4[%c0_6, %c0_7] : memref<640x512xbf16, #tpu.memory_space<vmem>>, vector<640x512xbf16>
    %cst_8 = arith.constant dense<0.000000e+00> : vector<8x512xf32>
    %10 = tpu.matmul %8, %9, %cst_8 {dimension_numbers = #tpu.dot_dimension_numbers<[1], [0], [0], [1], [0, 0, 1, 1], [], []>} : vector<8x640xbf16>, vector<640x512xbf16>, vector<8x512xf32> -> vector<8x512xf32>
    %c0_9 = arith.constant 0 : index
    %c0_10 = arith.constant 0 : index
    %11 = vector.load %arg5[%c0_9, %c0_10] : memref<1x512xf32, #tpu.memory_space<vmem>>, vector<1x512xf32>
    %12 = vector.broadcast %11 : vector<1x512xf32> to vector<8x512xf32>
    %13 = arith.addf %10, %12 : vector<8x512xf32>
    %cst_11 = arith.constant 0.000000e+00 : f32
    %14 = vector.broadcast %cst_11 : f32 to vector<8x512xf32>
    %15 = arith.maximumf %13, %14 : vector<8x512xf32>
    %16 = arith.truncf %15 : vector<8x512xf32> to vector<8x512xbf16>
    %c0_12 = arith.constant 0 : index
    %c0_13 = arith.constant 0 : index
    %17 = vector.load %arg6[%c0_12, %c0_13] : memref<512x384xbf16, #tpu.memory_space<vmem>>, vector<512x384xbf16>
    %cst_14 = arith.constant dense<0.000000e+00> : vector<8x384xf32>
    %18 = tpu.matmul %16, %17, %cst_14 {dimension_numbers = #tpu.dot_dimension_numbers<[1], [0], [0], [1], [0, 0, 1, 1], [], []>} : vector<8x512xbf16>, vector<512x384xbf16>, vector<8x384xf32> -> vector<8x384xf32>
    %c0_15 = arith.constant 0 : index
    %c0_16 = arith.constant 0 : index
    %19 = vector.load %arg7[%c0_15, %c0_16] : memref<1x384xf32, #tpu.memory_space<vmem>>, vector<1x384xf32>
    %20 = vector.broadcast %19 : vector<1x384xf32> to vector<8x384xf32>
    %21 = arith.addf %18, %20 : vector<8x384xf32>
    %cst_17 = arith.constant 0.000000e+00 : f32
    %22 = vector.broadcast %cst_17 : f32 to vector<8x384xf32>
    %23 = arith.maximumf %21, %22 : vector<8x384xf32>
    %24 = arith.truncf %23 : vector<8x384xf32> to vector<8x384xbf16>
    %c0_18 = arith.constant 0 : index
    %c0_19 = arith.constant 0 : index
    %25 = vector.load %arg8[%c0_18, %c0_19] : memref<384x256xbf16, #tpu.memory_space<vmem>>, vector<384x256xbf16>
    %cst_20 = arith.constant dense<0.000000e+00> : vector<8x256xf32>
    %26 = tpu.matmul %24, %25, %cst_20 {dimension_numbers = #tpu.dot_dimension_numbers<[1], [0], [0], [1], [0, 0, 1, 1], [], []>} : vector<8x384xbf16>, vector<384x256xbf16>, vector<8x256xf32> -> vector<8x256xf32>
    %c0_21 = arith.constant 0 : index
    %c0_22 = arith.constant 0 : index
    %27 = vector.load %arg9[%c0_21, %c0_22] : memref<1x256xf32, #tpu.memory_space<vmem>>, vector<1x256xf32>
    %28 = vector.broadcast %27 : vector<1x256xf32> to vector<8x256xf32>
    %29 = arith.addf %26, %28 : vector<8x256xf32>
    %cst_23 = arith.constant 0.000000e+00 : f32
    %30 = vector.broadcast %cst_23 : f32 to vector<8x256xf32>
    %31 = arith.maximumf %29, %30 : vector<8x256xf32>
    %32 = arith.truncf %31 : vector<8x256xf32> to vector<8x256xbf16>
    %c0_24 = arith.constant 0 : index
    %c0_25 = arith.constant 0 : index
    %33 = vector.load %arg10[%c0_24, %c0_25] : memref<256x128xbf16, #tpu.memory_space<vmem>>, vector<256x128xbf16>
    %cst_26 = arith.constant dense<0.000000e+00> : vector<8x128xf32>
    %34 = tpu.matmul %32, %33, %cst_26 {dimension_numbers = #tpu.dot_dimension_numbers<[1], [0], [0], [1], [0, 0, 1, 1], [], []>} : vector<8x256xbf16>, vector<256x128xbf16>, vector<8x128xf32> -> vector<8x128xf32>
    %c0_27 = arith.constant 0 : index
    %c0_28 = arith.constant 0 : index
    %35 = vector.load %arg11[%c0_27, %c0_28] : memref<1x128xf32, #tpu.memory_space<vmem>>, vector<1x128xf32>
    %36 = vector.broadcast %35 : vector<1x128xf32> to vector<8x128xf32>
    %37 = arith.addf %34, %36 : vector<8x128xf32>
    %c0_29 = arith.constant 0 : index
    %c0_30 = arith.constant 0 : index
    %38 = vector.load %arg12[%c0_29, %c0_30] : memref<8x128xf32, #tpu.memory_space<vmem>>, vector<8x128xf32>
    tpu.vector_store %arg12[%c0_29, %c0_30], %37 {strides = array<i32>} : memref<8x128xf32, #tpu.memory_space<vmem>>, vector<8x128xf32>,
    return
  }
  func.func @transform_0(%arg0: i32) -> (i32, i32) {
    %c0_i32 = arith.constant 0 : i32
    %c0_i32_0 = arith.constant 0 : i32
    return %arg0, %c0_i32 : i32, i32
  }
  func.func @transform_1(%arg0: i32) -> (i32, i32) {
    %c0_i32 = arith.constant 0 : i32
    %c0_i32_0 = arith.constant 0 : i32
    %c0_i32_1 = arith.constant 0 : i32
    return %c0_i32, %c0_i32_0 : i32, i32
  }
  func.func @transform_2(%arg0: i32) -> (i32, i32) {
    %c0_i32 = arith.constant 0 : i32
    %c0_i32_0 = arith.constant 0 : i32
    %c0_i32_1 = arith.constant 0 : i32
    return %c0_i32, %c0_i32_0 : i32, i32
  }
  func.func @transform_3(%arg0: i32) -> (i32, i32) {
    %c0_i32 = arith.constant 0 : i32
    %c0_i32_0 = arith.constant 0 : i32
    %c0_i32_1 = arith.constant 0 : i32
    return %c0_i32, %c0_i32_0 : i32, i32
  }
  func.func @transform_4(%arg0: i32) -> (i32, i32) {
    %c0_i32 = arith.constant 0 : i32
    %c0_i32_0 = arith.constant 0 : i32
    %c0_i32_1 = arith.constant 0 : i32
    return %c0_i32, %c0_i32_0 : i32, i32
  }
  func.func @transform_5(%arg0: i32) -> (i32, i32) {
    %c0_i32 = arith.constant 0 : i32
    %c0_i32_0 = arith.constant 0 : i32
    %c0_i32_1 = arith.constant 0 : i32
    return %c0_i32, %c0_i32_0 : i32, i32
  }
  func.func @transform_6(%arg0: i32) -> (i32, i32) {
    %c0_i32 = arith.constant 0 : i32
    %c0_i32_0 = arith.constant 0 : i32
    %c0_i32_1 = arith.constant 0 : i32
    return %c0_i32, %c0_i32_0 : i32, i32
  }
  func.func @transform_7(%arg0: i32) -> (i32, i32) {
    %c0_i32 = arith.constant 0 : i32
    %c0_i32_0 = arith.constant 0 : i32
    %c0_i32_1 = arith.constant 0 : i32
    return %c0_i32, %c0_i32_0 : i32, i32
  }
  func.func @transform_8(%arg0: i32) -> (i32, i32) {
    %c0_i32 = arith.constant 0 : i32
    %c0_i32_0 = arith.constant 0 : i32
    %c0_i32_1 = arith.constant 0 : i32
    return %c0_i32, %c0_i32_0 : i32, i32
  }
  func.func @transform_9(%arg0: i32) -> (i32, i32) {
    %c0_i32 = arith.constant 0 : i32
    %c0_i32_0 = arith.constant 0 : i32
    %c0_i32_1 = arith.constant 0 : i32
    return %c0_i32, %c0_i32_0 : i32, i32
  }
  func.func @transform_10(%arg0: i32) -> (i32, i32) {
    %c0_i32 = arith.constant 0 : i32
    %c0_i32_0 = arith.constant 0 : i32
    %c0_i32_1 = arith.constant 0 : i32
    return %c0_i32, %c0_i32_0 : i32, i32
  }
  func.func @transform_11(%arg0: i32) -> (i32, i32) {
    %c0_i32 = arith.constant 0 : i32
    %c0_i32_0 = arith.constant 0 : i32
    return %arg0, %c0_i32 : i32, i32
  }
}

</mosaic_0001>

<bundles_post_ra>
// kernel: simple_linear_forward.1
= control target key start
LH: loop header
LB: loop body
LE: loop exit
PB: predicated region body
PF: predicated region fallthrough
CT: control target
= control target key end

     0   :  { %16 = vsyncpa [#allocation3], 0  ;;  %s6971_s0 = inlined_call_operand.vmem [shape: bf16[8,784], index: 0, kind: input, shape index: {}]   ;;  %s6972_s1 = inlined_call_operand.hbm [shape: bf16[784,640], index: 1, kind: input, shape index: {}]   ;;  %s6973_s2 = inlined_call_operand.vmem [shape: f32[1,640], index: 2, kind: input, shape index: {}]   ;;  %s6974_s3 = inlined_call_operand.hbm [shape: bf16[640,512], index: 3, kind: input, shape index: {}]   ;;  %s6975_s4 = inlined_call_operand.hbm [shape: f32[1,512], index: 4, kind: input, shape index: {}]   ;;  %s6976_s5 = inlined_call_operand.hbm [shape: bf16[512,384], index: 5, kind: input, shape index: {}]   ;;  %s6977_s6 = inlined_call_operand.vmem [shape: f32[1,384], index: 6, kind: input, shape index: {}]   ;;  %s6978_s7 = inlined_call_operand.vmem [shape: bf16[384,256], index: 7, kind: input, shape index: {}]   ;;  %s6979_s8 = inlined_call_operand.hbm [shape: f32[1,256], index: 8, kind: input, shape index: {}]   ;;  %s6980_s9 = inlined_call_operand.vmem [shape: bf16[256,128], index: 9, kind: input, shape index: {}]   ;;  %s6981_s10 = inlined_call_operand.vmem [shape: f32[1,128], index: 10, kind: input, shape index: {}]   ;;  %s6982_s11 = inlined_call_operand.hbm [shape: f32[8,128], index: 11, kind: output, shape index: {}]  }
   0x1   :  { %17 = vsyncpa [#allocation6], 0 }
   0x2   :  { %18 = vsyncpa [#allocation9], 0 }
   0x3   :  { %19 = vsyncpa [#allocation4], 0  ;;  %s6535_s17 = smov [#allocation5]  }
   0x4   :  { %s41_s18 = sshll.u32 %s6535_s17, 4  ;;  %s42_s18 = int_to_ptr.vmem [resolvable:$true] %s41_s18 }
   0x5   :  { %s6415_s19 = scalar_lea.vmem %s42_s18, 20480  ;;  %p6420_p1 = scmp.lt.s32.totalorder %s42_s18, %s42_s18 }
   0x6   :  { %p6416_p0 = scmp.ne.s32.totalorder %s42_s18, %s6415_s19  ;;  %p6421_p2 = scmp.lt.s32.totalorder %s6415_s19, %s6415_s19 }
   0x8   :  { %p6422_p3 = por %p6421_p2, %p6420_p1 }
   0xa   :  { %p6423_p4 = pnand %p6422_p3, %p6416_p0 }
   0xc   :  { %6426 = shalt.err (!%p6423_p4)
}
   0xd   :  { %s6536_s20 = smov 256   ;;  %s6537_s21 = smov 16  }
   0xe   :  { %47 = dma.hbm_to_vmem [thread:$0]  %s6974_s3, 20480, %s42_s18, [#allocation6], %s6536_s20, %s6536_s20, %s6537_s21  }
   0xf   :  { %s6538_s24 = smov [#allocation8]  }
  0x10   :  { %s63_s25 = sshll.u32 %s6538_s24, 4  ;;  %s64_s25 = int_to_ptr.vmem [resolvable:$true] %s63_s25 }
  0x11   :  { %s6435_s26 = scalar_lea.vmem %s64_s25, 12288  ;;  %p6440_p6 = scmp.lt.s32.totalorder %s64_s25, %s64_s25 }
  0x12   :  { %p6436_p5 = scmp.ne.s32.totalorder %s64_s25, %s6435_s26  ;;  %p6441_p7 = scmp.lt.s32.totalorder %s6435_s26, %s6435_s26 }
  0x14   :  { %p6442_p8 = por %p6441_p7, %p6440_p6 }
  0x16   :  { %p6443_p9 = pnand %p6442_p8, %p6436_p5 }
  0x18   :  { %6446 = shalt.err (!%p6443_p9)
}
  0x19   :  { %s6539_s27 = smov 192   ;;  %s6540_s28 = smov 12  }
  0x1a   :  { %69 = dma.hbm_to_vmem [thread:$0]  %s6976_s5, 12288, %s64_s25, [#allocation9], %s6539_s27, %s6539_s27, %s6540_s28  }
  0x1b   :  { %s6541_s12 = smov [#allocation2]  }
  0x1c   :  { %s27_s13 = sshll.u32 %s6541_s12, 4  ;;  %s28_s13 = int_to_ptr.vmem [resolvable:$true] %s27_s13 }
  0x1d   :  { %s6455_s3 = scalar_lea.vmem %s28_s13, 31360  ;;  %p6460_p11 = scmp.lt.s32.totalorder %s28_s13, %s28_s13 }
  0x1e   :  { %p6456_p10 = scmp.ne.s32.totalorder %s28_s13, %s6455_s3  ;;  %p6461_p12 = scmp.lt.s32.totalorder %s6455_s3, %s6455_s3 }
  0x20   :  { %p6462_p13 = por %p6461_p12, %p6460_p11 }
  0x22   :  { %p6463_p0 = pnand %p6462_p13, %p6456_p10 }
  0x24   :  { %6466 = shalt.err (!%p6463_p0)
}
  0x25   :  { %s6542_s14 = smov 320   ;;  %s6543_s15 = smov 20  }
  0x26   :  { %33 = dma.hbm_to_vmem [thread:$0]  %s6972_s1, 31360, %s28_s13, [#allocation3], %s6542_s14, %s6542_s14, %s6543_s15  }
  0x27   :  { %s6544_s18 = smov [#allocation7]   ;;  %s6545_s5 = smov [#allocation10]  }
  0x28   :  { %s54_s19 = sshll.u32 %s6544_s18, 4  ;;  %s80_s20 = sshll.u32 %s6545_s5, 4  ;;  %s55_s19 = int_to_ptr.vmem [resolvable:$true] %s54_s19  ;;  %s81_s20 = int_to_ptr.vmem [resolvable:$true] %s80_s20 }
  0x29   :  { %s6475_s21 = scalar_lea.vmem %s55_s19, 64  ;;  %p6480_p2 = scmp.lt.s32.totalorder %s55_s19, %s55_s19 }
  0x2a   :  { %p6476_p1 = scmp.ne.s32.totalorder %s55_s19, %s6475_s21  ;;  %p6481_p3 = scmp.lt.s32.totalorder %s6475_s21, %s6475_s21 }
  0x2c   :  { %p6482_p4 = por %p6481_p3, %p6480_p2 }
  0x2e   :  { %p6483_p5 = pnand %p6482_p4, %p6476_p1 }
  0x30   :  { %6486 = shalt.err (!%p6483_p5)
}
  0x31   :  { %57 = dma.hbm_to_vmem [thread:$0]  %s6975_s4, 64, %s55_s19, [#allocation6]  }
  0x32   :  { %s6495_s24 = scalar_lea.vmem %s81_s20, 32  ;;  %p6500_p7 = scmp.lt.s32.totalorder %s81_s20, %s81_s20 }
  0x33   :  { %p6496_p6 = scmp.ne.s32.totalorder %s81_s20, %s6495_s24  ;;  %p6501_p8 = scmp.lt.s32.totalorder %s6495_s24, %s6495_s24 }
  0x35   :  { %p6502_p9 = por %p6501_p8, %p6500_p7 }
  0x37   :  { %p6503_p10 = pnand %p6502_p9, %p6496_p6 }
  0x39   :  { %6506 = shalt.err (!%p6503_p10)
}
  0x3a   :  { %83 = dma.hbm_to_vmem [thread:$0]  %s6979_s8, 32, %s81_s20, [#allocation9]  }
  0x3b   :  { %6527 = dma.done.wait [#allocation3], 31360  }
  0x3c   :  { %6528 = vsyncadd [#allocation3], 4294935936 }
  0x3d   :  { %6529 = dma.done.wait [#allocation6], 20544  }
  0x3e   :  { %6530 = vsyncadd [#allocation6], 4294946752 }
  0x3f   :  { %6531 = dma.done.wait [#allocation9], 12320  }
  0x40   :  { %6532 = vsyncadd [#allocation9], 4294954976  ;;  %v5600_v0 = vld [vmem:[#allocation2 + $0x11c] ss:$20 sps:$4 sm:$0xff]   ;;  %v5604_v2 = vld [vmem:[#allocation2 + $0x118] ss:$20 sps:$4 sm:$0xff]  }
  0x41   :  { %v5602_v1 = vld [vmem:[#allocation2 + $0x39c] ss:$20 sps:$4 sm:$0xff]   ;;  %1731 = vmatprep.subr.bf16.mxu0 %v5600_v0  ;;  %v5605_v3 = vld [vmem:[#allocation2 + $0x398] ss:$20 sps:$4 sm:$0xff]   ;;  %v5606_v4 = vld [vmem:[#allocation2 + $0xf4] ss:$20 sps:$4 sm:$0xff]  }
  0x42   :  { %1772 = vmatprep.subr.bf16.mxu1 %v5602_v1  ;;  %1732 = vmatpush1.bf16.msra.mxu0 %v5604_v2  ;;  %v5608_v5 = vld [vmem:[#allocation2 + $0x374] ss:$20 sps:$4 sm:$0xff]   ;;  %v5610_v6 = vld [vmem:[#allocation2 + $0xf0] ss:$20 sps:$4 sm:$0xff]   ;;  %v5612_v8 = vld [vmem:[#allocation2 + $0xcc] ss:$20 sps:$4 sm:$0xff]  }
  0x43   :  { %1773 = vmatpush1.bf16.msra.mxu1 %v5605_v3  ;;  %1733 = vmatprep.subr.bf16.mxu0 %v5606_v4  ;;  %v5611_v7 = vld [vmem:[#allocation2 + $0x370] ss:$20 sps:$4 sm:$0xff]   ;;  %v5614_v9 = vld [vmem:[#allocation2 + $0x34c] ss:$20 sps:$4 sm:$0xff]   ;;  %v5616_v10 = vld [vmem:[#allocation2 + $0xc8] ss:$20 sps:$4 sm:$0xff]  }
  0x44   :  { %1774 = vmatprep.subr.bf16.mxu1 %v5608_v5  ;;  %v5617_v11 = vld [vmem:[#allocation2 + $0x348] ss:$20 sps:$4 sm:$0xff]   ;;  %v5618_v12 = vld [vmem:[#allocation2 + $0xa4] ss:$20 sps:$4 sm:$0xff]   ;;  %v5622_v14 = vld [vmem:[#allocation2 + $0xa0] ss:$20 sps:$4 sm:$0xff]  }
  0x45   :  { %v5620_v13 = vld [vmem:[#allocation2 + $0x324] ss:$20 sps:$4 sm:$0xff]   ;;  %v5623_v15 = vld [vmem:[#allocation2 + $0x320] ss:$20 sps:$4 sm:$0xff]   ;;  %v5624_v16 = vld [vmem:[#allocation2 + $0x7c] ss:$20 sps:$4 sm:$0xff]  }
  0x46   :  { %1734 = vmatpush1.bf16.msra.mxu0 %v5610_v6  ;;  %v5626_v17 = vld [vmem:[#allocation2 + $0x2fc] ss:$20 sps:$4 sm:$0xff]   ;;  %v5628_v18 = vld [vmem:[#allocation2 + $0x78] ss:$20 sps:$4 sm:$0xff]   ;;  %v5630_v20 = vld [vmem:[#allocation2 + $0x54] ss:$20 sps:$4 sm:$0xff]  }
  0x47   :  { %1775 = vmatpush1.bf16.msra.mxu1 %v5611_v7  ;;  %1735 = vmatprep.subr.bf16.mxu0 %v5612_v8  ;;  %v5629_v19 = vld [vmem:[#allocation2 + $0x2f8] ss:$20 sps:$4 sm:$0xff]   ;;  %v5632_v21 = vld [vmem:[#allocation2 + $0x2d4] ss:$20 sps:$4 sm:$0xff]   ;;  %v5634_v22 = vld [vmem:[#allocation2 + $0x50] ss:$20 sps:$4 sm:$0xff]  }
  0x48   :  { %1776 = vmatprep.subr.bf16.mxu1 %v5614_v9  ;;  %v5635_v23 = vld [vmem:[#allocation2 + $0x2d0] ss:$20 sps:$4 sm:$0xff]   ;;  %v5636_v24 = vld [vmem:[#allocation2 + $0x2c] ss:$20 sps:$4 sm:$0xff]   ;;  %v5640_v26 = vld [vmem:[#allocation2 + $0x28] ss:$20 sps:$4 sm:$0xff]  }
  0x49   :  { %v5638_v25 = vld [vmem:[#allocation2 + $0x2ac] ss:$20 sps:$4 sm:$0xff]   ;;  %v5641_v27 = vld [vmem:[#allocation2 + $0x2a8] ss:$20 sps:$4 sm:$0xff]   ;;  %v5642_v28 = vld [vmem:[#allocation2 + $0x4] ss:$20 sps:$4 sm:$0xff]  }
  0x4a   :  { %1736 = vmatpush1.bf16.msra.mxu0 %v5616_v10  ;;  %v5644_v29 = vld [vmem:[#allocation2 + $0x284] ss:$20 sps:$4 sm:$0xff]   ;;  %v5646_v30 = vld [vmem:[#allocation2] ss:$20 sps:$4 sm:$0xff]   ;;  %v5648_v32 = vld [vmem:[#allocation2 + $0x25c] ss:$20 sps:$4 sm:$0xff]  }
  0x4b   :  { %1777 = vmatpush1.bf16.msra.mxu1 %v5617_v11  ;;  %1737 = vmatprep.subr.bf16.mxu0 %v5618_v12  ;;  %v5647_v31 = vld [vmem:[#allocation2 + $0x280] ss:$20 sps:$4 sm:$0xff]   ;;  %v5650_v33 = vld [vmem:[#allocation2 + $0x4dc] ss:$20 sps:$4 sm:$0xff]   ;;  %v5652_v34 = vld [vmem:[#allocation2 + $0x258] ss:$20 sps:$4 sm:$0xff]  }
  0x4c   :  { %1778 = vmatprep.subr.bf16.mxu1 %v5620_v13  ;;  %v5653_v35 = vld [vmem:[#allocation2 + $0x4d8] ss:$20 sps:$4 sm:$0xff]   ;;  %v5654_v36 = vld [vmem:[#allocation2 + $0x234] ss:$20 sps:$4 sm:$0xff]   ;;  %v5658_v38 = vld [vmem:[#allocation2 + $0x230] ss:$20 sps:$4 sm:$0xff]  }
  0x4d   :  { %v5656_v37 = vld [vmem:[#allocation2 + $0x4b4] ss:$20 sps:$4 sm:$0xff]   ;;  %v5659_v39 = vld [vmem:[#allocation2 + $0x4b0] ss:$20 sps:$4 sm:$0xff]   ;;  %v5660_v40 = vld [vmem:[#allocation2 + $0x20c] ss:$20 sps:$4 sm:$0xff]  }
  0x4e   :  { %1738 = vmatpush1.bf16.msra.mxu0 %v5622_v14  ;;  %v5662_v41 = vld [vmem:[#allocation2 + $0x48c] ss:$20 sps:$4 sm:$0xff]   ;;  %v5664_v42 = vld [vmem:[#allocation2 + $0x208] ss:$20 sps:$4 sm:$0xff]   ;;  %v5666_v44 = vld [vmem:[#allocation2 + $0x1e4] ss:$20 sps:$4 sm:$0xff]  }
  0x4f   :  { %1779 = vmatpush1.bf16.msra.mxu1 %v5623_v15  ;;  %1739 = vmatprep.subr.bf16.mxu0 %v5624_v16  ;;  %v5665_v43 = vld [vmem:[#allocation2 + $0x488] ss:$20 sps:$4 sm:$0xff]   ;;  %v5668_v45 = vld [vmem:[#allocation2 + $0x464] ss:$20 sps:$4 sm:$0xff]   ;;  %v5670_v49 = vld [vmem:[#allocation2 + $0x1e0] ss:$20 sps:$4 sm:$0xff]  }
  0x50   :  { %1780 = vmatprep.subr.bf16.mxu1 %v5626_v17  ;;  %v104_v46 = vld [vmem:[%s6971_s0] sm:$0xff]  ;;  %v105_v48 = vld [vmem:[%s6971_s0 + $0x8] sm:$0xff]  ;;  %v5672_v52 = vld [vmem:[#allocation2 + $0x1bc] ss:$20 sps:$4 sm:$0xff]   ;;  %v6546_v13 = vmov 0   ;;  %vm1727_vm0 = vcmask 130048  }
  0x51   :  { %v6628_v47 = vcombine.high %v104_v46, %v104_v46  ;;  %v5671_v50 = vld [vmem:[#allocation2 + $0x460] ss:$20 sps:$4 sm:$0xff]   ;;  %v6633_v51 = vcombine.high %v105_v48, %v105_v48  ;;  %v5674_v53 = vld [vmem:[#allocation2 + $0x43c] ss:$20 sps:$4 sm:$0xff]   ;;  %v5676_v54 = vld [vmem:[#allocation2 + $0x1b8] ss:$20 sps:$4 sm:$0xff]   ;;  %v6637_v6 = vcombine.low %v104_v46, %v104_v46  ;;  %v6639_v7 = vcombine.low %v105_v48, %v105_v48 }
  0x52   :  { %1740 = vmatpush1.bf16.msra.mxu0 %v5628_v18  ;;  %v5677_v55 = vld [vmem:[#allocation2 + $0x438] ss:$20 sps:$4 sm:$0xff]   ;;  %v5678_v56 = vld [vmem:[#allocation2 + $0x194] ss:$20 sps:$4 sm:$0xff]   ;;  %v5682_v58 = vld [vmem:[#allocation2 + $0x190] ss:$20 sps:$4 sm:$0xff]  }
  0x53   :  { %1781 = vmatpush1.bf16.msra.mxu1 %v5629_v19  ;;  %1741 = vmatprep.subr.bf16.mxu0 %v5630_v20  ;;  %v5680_v57 = vld [vmem:[#allocation2 + $0x414] ss:$20 sps:$4 sm:$0xff]   ;;  %v5683_v59 = vld [vmem:[#allocation2 + $0x410] ss:$20 sps:$4 sm:$0xff]   ;;  %v5684_v60 = vld [vmem:[#allocation2 + $0x16c] ss:$20 sps:$4 sm:$0xff]  }
  0x54   :  { %1782 = vmatprep.subr.bf16.mxu1 %v5632_v21  ;;  %1763 = vmatprep.mubr.bf16.mxu0 %v6628_v47  ;;  %v5686_v61 = vld [vmem:[#allocation2 + $0x3ec] ss:$20 sps:$4 sm:$0xff]   ;;  %v5688_v62 = vld [vmem:[#allocation2 + $0x168] ss:$20 sps:$4 sm:$0xff]   ;;  %v5690_v0 = vld [vmem:[#allocation2 + $0x144] ss:$20 sps:$4 sm:$0xff]  }
  0x55   :  { %1804 = vmatprep.mubr.bf16.mxu1 %v6633_v51  ;;  %v5689_v63 = vld [vmem:[#allocation2 + $0x3e8] ss:$20 sps:$4 sm:$0xff]   ;;  %v5692_v1 = vld [vmem:[#allocation2 + $0x3c4] ss:$20 sps:$4 sm:$0xff]   ;;  %v5694_v2 = vld [vmem:[#allocation2 + $0x140] ss:$20 sps:$4 sm:$0xff]  }
  0x56   :  { %1742 = vmatpush1.bf16.msra.mxu0 %v5634_v22  ;;  %v5695_v3 = vld [vmem:[#allocation2 + $0x3c0] ss:$20 sps:$4 sm:$0xff]   ;;  %v5702_v4 = vld [vmem:[#allocation2 + $0x61c] ss:$20 sps:$4 sm:$0xff]   ;;  %v5705_v5 = vld [vmem:[#allocation2 + $0x784] ss:$20 sps:$4 sm:$0xff]  }
  0x57   :  { %1783 = vmatpush1.bf16.msra.mxu1 %v5635_v23  ;;  %1743 = vmatprep.subr.bf16.mxu0 %v5636_v24  ;;  %v5700_v8 = vld [vmem:[#allocation2 + $0x618] ss:$20 sps:$4 sm:$0xff]   ;;  %v5703_v9 = vld [vmem:[#allocation2 + $0x780] ss:$20 sps:$4 sm:$0xff]   ;;  %v5706_v12 = vld [vmem:[#allocation2 + $0x5f0] ss:$20 sps:$4 sm:$0xff]  }
  0x58   :  { %1784 = vmatprep.subr.bf16.mxu1 %v5638_v25  ;;  %v5708_v10 = vld [vmem:[#allocation2 + $0x5f4] ss:$20 sps:$4 sm:$0xff]   ;;  %v5711_v11 = vld [vmem:[#allocation2 + $0x124] ss:$20 sps:$4 sm:$0xff]   ;;  %v5714_v14 = vld [vmem:[#allocation2 + $0x5cc] ss:$20 sps:$4 sm:$0xff]  }
  0x59   :  { %v5709_v15 = vld [vmem:[#allocation2 + $0x120] ss:$20 sps:$4 sm:$0xff]   ;;  %v5712_v16 = vld [vmem:[#allocation2 + $0x5c8] ss:$20 sps:$4 sm:$0xff]   ;;  %v5715_v17 = vld [vmem:[%s6971_s0 + $0x18] ss:$0 sps:$4 sm:$0xff]  }
  0x5a   :  { %1744 = vmatpush1.bf16.msra.mxu0 %v5640_v26  ;;  %v5718_v18 = vld [vmem:[#allocation2 + $0xfc] ss:$20 sps:$4 sm:$0xff]   ;;  %v5721_v19 = vld [vmem:[#allocation2 + $0x5a4] ss:$20 sps:$4 sm:$0xff]   ;;  %v5719_v21 = vld [vmem:[#allocation2 + $0x5a0] ss:$20 sps:$4 sm:$0xff]  }
  0x5b   :  { %1785 = vmatpush1.bf16.msra.mxu1 %v5641_v27  ;;  %1745 = vmatprep.subr.bf16.mxu0 %v5642_v28  ;;  %v5716_v20 = vld [vmem:[#allocation2 + $0xf8] ss:$20 sps:$4 sm:$0xff]   ;;  %v5724_v22 = vld [vmem:[#allocation2 + $0xd4] ss:$20 sps:$4 sm:$0xff]   ;;  %v5727_v23 = vld [vmem:[#allocation2 + $0x57c] ss:$20 sps:$4 sm:$0xff]  }
  0x5c   :  { %1786 = vmatprep.subr.bf16.mxu1 %v5644_v29  ;;  %v5722_v24 = vld [vmem:[#allocation2 + $0xd0] ss:$20 sps:$4 sm:$0xff]   ;;  %v5725_v25 = vld [vmem:[#allocation2 + $0x578] ss:$20 sps:$4 sm:$0xff]   ;;  %v5733_v27 = vld [vmem:[#allocation2 + $0x554] ss:$20 sps:$4 sm:$0xff]  }
  0x5d   :  { %v5730_v26 = vld [vmem:[#allocation2 + $0xac] ss:$20 sps:$4 sm:$0xff]   ;;  %v5728_v28 = vld [vmem:[#allocation2 + $0xa8] ss:$20 sps:$4 sm:$0xff]   ;;  %v5731_v29 = vld [vmem:[#allocation2 + $0x550] ss:$20 sps:$4 sm:$0xff]  }
  0x5e   :  { %1746 = vmatpush1.bf16.msra.mxu0 %v5646_v30  ;;  %v5736_v30 = vld [vmem:[#allocation2 + $0x84] ss:$20 sps:$4 sm:$0xff]   ;;  %v5752_v46 = vld [vmem:[#allocation2 + $0x8] ss:$20 sps:$4 sm:$0xff]   ;;  %vm6548_vm1 = vmmov 0   ;;  %s6549_s3 = smov [#allocation11]  }
  0x5f   :  { %1787 = vmatpush1.bf16.msra.mxu1 %v5647_v31  ;;  %1747 = vmatprep.subr.bf16.mxu0 %v5648_v32  ;;  %v5739_v31 = vld [vmem:[#allocation2 + $0x52c] ss:$20 sps:$4 sm:$0xff]   ;;  %v6652_v32 = vld [vmem:[%s6971_s0 + $0x10] sm:$0xff] }
  0x60   :  { %1788 = vmatprep.subr.bf16.mxu1 %v5650_v33  ;;  %v6656_v33 = vcombine.high %v6652_v32, %v6652_v32  ;;  %v5755_v48 = vld [vmem:[#allocation2 + $0x730] ss:$20 sps:$4 sm:$0xff]  }
  0x62   :  { %1748 = vmatpush2.bf16.msra.mxu0 %v5652_v34  ;;  %v5734_v34 = vld [vmem:[#allocation2 + $0x80] ss:$20 sps:$4 sm:$0xff]  }
  0x63   :  { %1789 = vmatpush2.bf16.msra.mxu1 %v5653_v35  ;;  %1749 = vmatprep.subr.bf16.mxu0 %v5654_v36  ;;  %v5737_v35 = vld [vmem:[#allocation2 + $0x528] ss:$20 sps:$4 sm:$0xff]  }
  0x64   :  { %1790 = vmatprep.subr.bf16.mxu1 %v5656_v37  ;;  %v5742_v36 = vld [vmem:[#allocation2 + $0x5c] ss:$20 sps:$4 sm:$0xff]   ;;  %v5745_v37 = vld [vmem:[#allocation2 + $0x504] ss:$20 sps:$4 sm:$0xff]  }
  0x66   :  { %1750 = vmatpush2.bf16.msra.mxu0 %v5658_v38  ;;  %v5740_v38 = vld [vmem:[#allocation2 + $0x58] ss:$20 sps:$4 sm:$0xff]  }
  0x67   :  { %1791 = vmatpush2.bf16.msra.mxu1 %v5659_v39  ;;  %1751 = vmatprep.subr.bf16.mxu0 %v5660_v40  ;;  %v5743_v39 = vld [vmem:[#allocation2 + $0x500] ss:$20 sps:$4 sm:$0xff]  }
  0x68   :  { %1792 = vmatprep.subr.bf16.mxu1 %v5662_v41  ;;  %v5748_v40 = vld [vmem:[#allocation2 + $0x34] ss:$20 sps:$4 sm:$0xff]   ;;  %v5751_v41 = vld [vmem:[#allocation2 + $0x75c] ss:$20 sps:$4 sm:$0xff]  }
  0x6a   :  { %1752 = vmatpush2.bf16.msra.mxu0 %v5664_v42  ;;  %v5746_v42 = vld [vmem:[#allocation2 + $0x30] ss:$20 sps:$4 sm:$0xff]  }
  0x6b   :  { %1793 = vmatpush2.bf16.msra.mxu1 %v5665_v43  ;;  %1753 = vmatprep.subr.bf16.mxu0 %v5666_v44  ;;  %v5749_v43 = vld [vmem:[#allocation2 + $0x758] ss:$20 sps:$4 sm:$0xff]  }
  0x6c   :  { %1794 = vmatprep.subr.bf16.mxu1 %v5668_v45  ;;  %v5754_v44 = vld [vmem:[#allocation2 + $0xc] ss:$20 sps:$4 sm:$0xff]   ;;  %v5757_v45 = vld [vmem:[#allocation2 + $0x734] ss:$20 sps:$4 sm:$0xff]  }
  0x6e   :  { %1754 = vmatpush2.bf16.msra.mxu0 %v5670_v49  ;;  %v5760_v49 = vld [vmem:[#allocation2 + $0x264] ss:$20 sps:$4 sm:$0xff]  }
  0x6f   :  { %1795 = vmatpush2.bf16.msra.mxu1 %v5671_v50  ;;  %1755 = vmatprep.subr.bf16.mxu0 %v5672_v52  ;;  %v5763_v50 = vld [vmem:[#allocation2 + $0x70c] ss:$20 sps:$4 sm:$0xff]  }
  0x70   :  { %1796 = vmatprep.subr.bf16.mxu1 %v5674_v53  ;;  %v5758_v52 = vld [vmem:[#allocation2 + $0x260] ss:$20 sps:$4 sm:$0xff]   ;;  %v5761_v53 = vld [vmem:[#allocation2 + $0x708] ss:$20 sps:$4 sm:$0xff]  }
  0x72   :  { %1756 = vmatpush2.bf16.msra.mxu0 %v5676_v54  ;;  %v5766_v54 = vld [vmem:[#allocation2 + $0x23c] ss:$20 sps:$4 sm:$0xff]  }
  0x73   :  { %1797 = vmatpush2.bf16.msra.mxu1 %v5677_v55  ;;  %1757 = vmatprep.subr.bf16.mxu0 %v5678_v56  ;;  %v5769_v55 = vld [vmem:[#allocation2 + $0x6e4] ss:$20 sps:$4 sm:$0xff]  }
  0x74   :  { %1798 = vmatprep.subr.bf16.mxu1 %v5680_v57  ;;  %v5764_v56 = vld [vmem:[#allocation2 + $0x238] ss:$20 sps:$4 sm:$0xff]   ;;  %v5767_v57 = vld [vmem:[#allocation2 + $0x6e0] ss:$20 sps:$4 sm:$0xff]  }
  0x76   :  { %1758 = vmatpush2.bf16.msra.mxu0 %v5682_v58  ;;  %v5772_v58 = vld [vmem:[#allocation2 + $0x214] ss:$20 sps:$4 sm:$0xff]  }
  0x77   :  { %1799 = vmatpush2.bf16.msra.mxu1 %v5683_v59  ;;  %1759 = vmatprep.subr.bf16.mxu0 %v5684_v60  ;;  %v5775_v59 = vld [vmem:[#allocation2 + $0x6bc] ss:$20 sps:$4 sm:$0xff]  }
  0x78   :  { %1800 = vmatprep.subr.bf16.mxu1 %v5686_v61  ;;  %v5770_v60 = vld [vmem:[#allocation2 + $0x210] ss:$20 sps:$4 sm:$0xff]   ;;  %v5773_v61 = vld [vmem:[#allocation2 + $0x6b8] ss:$20 sps:$4 sm:$0xff]  }
  0x7a   :  { %1760 = vmatpush2.bf16.msra.mxu0 %v5688_v62  ;;  %v5778_v62 = vld [vmem:[#allocation2 + $0x1ec] ss:$20 sps:$4 sm:$0xff]  }
  0x7b   :  { %1801 = vmatpush2.bf16.msra.mxu1 %v5689_v63  ;;  %1761 = vmatprep.subr.bf16.mxu0 %v5690_v0  ;;  %v5781_v63 = vld [vmem:[#allocation2 + $0x694] ss:$20 sps:$4 sm:$0xff]  }
  0x7c   :  { %1802 = vmatprep.subr.bf16.mxu1 %v5692_v1  ;;  %v5776_v0 = vld [vmem:[#allocation2 + $0x1e8] ss:$20 sps:$4 sm:$0xff]   ;;  %v5779_v1 = vld [vmem:[#allocation2 + $0x690] ss:$20 sps:$4 sm:$0xff]  }
  0x7e   :  { %1762 = vmatpush2.bf16.msra.mxu0 %v5694_v2  ;;  %v5784_v2 = vld [vmem:[#allocation2 + $0x1c4] ss:$20 sps:$4 sm:$0xff]  }
  0x7f   :  { %1803 = vmatpush2.bf16.msra.mxu1 %v5695_v3  ;;  %1813 = vmatprep.subr.bf16.mxu0 %v5702_v4  ;;  %v5787_v3 = vld [vmem:[#allocation2 + $0x66c] ss:$20 sps:$4 sm:$0xff]  }
  0x80   :  { %1868 = vmatprep.subr.bf16.mxu1 %v5705_v5  ;;  %v5782_v4 = vld [vmem:[#allocation2 + $0x1c0] ss:$20 sps:$4 sm:$0xff]   ;;  %v5785_v5 = vld [vmem:[#allocation2 + $0x668] ss:$20 sps:$4 sm:$0xff]  }
  0x81   :  { %1764 = vmatmul.mubr.bf16.vlgmr.msra.gmra.mxu0 %v6637_v6 }
  0x82   :  { %1805 = vmatmul.mubr.bf16.vlgmr.msra.gmra.mxu1 %v6639_v7  ;;  %1814 = vmatpush1.bf16.msra.mxu0 %v5700_v8  ;;  %v5790_v8 = vld [vmem:[#allocation2 + $0x19c] ss:$20 sps:$4 sm:$0xff]  }
  0x83   :  { %1869 = vmatpush1.bf16.msra.mxu1 %v5703_v9  ;;  %1815 = vmatprep.subr.bf16.mxu0 %v5708_v10  ;;  %v5793_v9 = vld [vmem:[#allocation2 + $0x644] ss:$20 sps:$4 sm:$0xff]  }
  0x84   :  { %1886 = vmatprep.mubr.bf16.mxu1 %v6546_v13  ;;  %1895 = vmatprep.subr.bf16.mxu1 %v5711_v11  ;;  %v5788_v10 = vld [vmem:[#allocation2 + $0x198] ss:$20 sps:$4 sm:$0xff]   ;;  %v5791_v11 = vld [vmem:[#allocation2 + $0x640] ss:$20 sps:$4 sm:$0xff]  }
  0x85   :  { %1845 = vmatprep.mubr.bf16.mxu0 %v6656_v33 }
  0x86   :  { %1816 = vmatpush1.bf16.msra.mxu0 %v5706_v12  ;;  %v5798_v12 = vld [vmem:[#allocation2 + $0x174] ss:$20 sps:$4 sm:$0xff]  }
  0x87   :  { %1817 = vmatprep.subr.bf16.mxu0 %v5714_v14  ;;  %v5801_v14 = vld [vmem:[#allocation2 + $0x3a4] ss:$20 sps:$4 sm:$0xff]  }
  0x8a   :  { %5121 = vmatmul.mubr.msk.bf16.vlgmr.msra.gmra.mxu1 %vm1727_vm0, %v5715_v17  ;;  %1818 = vmatpush1.bf16.msra.mxu0 %v5712_v16  ;;  %v5796_v16 = vld [vmem:[#allocation2 + $0x170] ss:$20 sps:$4 sm:$0xff]   ;;  %v5799_v17 = vld [vmem:[#allocation2 + $0x3a0] ss:$20 sps:$4 sm:$0xff]  }
  0x8b   :  { %1896 = vmatpush1.bf16.msra.mxu1 %v5709_v15  ;;  %1819 = vmatprep.subr.bf16.mxu0 %v5721_v19  ;;  %v6661_v15 = vcombine.low %v6652_v32, %v6652_v32  ;;  %v5807_v19 = vld [vmem:[#allocation2 + $0x37c] ss:$20 sps:$4 sm:$0xff]  }
  0x8c   :  { %1897 = vmatprep.subr.bf16.mxu1 %v5718_v18  ;;  %1927 = vmatprep.mubr.bf16.mxu1 %v6628_v47  ;;  %v5804_v18 = vld [vmem:[#allocation2 + $0x14c] ss:$20 sps:$4 sm:$0xff]   ;;  %v5820_v32 = vld [vmem:[#allocation2 + $0x5d0] ss:$20 sps:$4 sm:$0xff]  }
  0x8e   :  { %1820 = vmatpush1.bf16.msra.mxu0 %v5719_v21  ;;  %v5805_v21 = vld [vmem:[#allocation2 + $0x378] ss:$20 sps:$4 sm:$0xff]  }
  0x8f   :  { %1898 = vmatpush1.bf16.msra.mxu1 %v5716_v20  ;;  %1821 = vmatprep.subr.bf16.mxu0 %v5727_v23  ;;  %v5802_v20 = vld [vmem:[#allocation2 + $0x148] ss:$20 sps:$4 sm:$0xff]  }
  0x90   :  { %1899 = vmatprep.subr.bf16.mxu1 %v5724_v22  ;;  %v5810_v22 = vld [vmem:[#allocation2 + $0x624] ss:$20 sps:$4 sm:$0xff]   ;;  %v5813_v23 = vld [vmem:[#allocation2 + $0x354] ss:$20 sps:$4 sm:$0xff]  }
  0x92   :  { %1822 = vmatpush1.bf16.msra.mxu0 %v5725_v25  ;;  %v5811_v25 = vld [vmem:[#allocation2 + $0x350] ss:$20 sps:$4 sm:$0xff]  }
  0x93   :  { %1900 = vmatpush1.bf16.msra.mxu1 %v5722_v24  ;;  %1823 = vmatprep.subr.bf16.mxu0 %v5733_v27  ;;  %v5808_v24 = vld [vmem:[#allocation2 + $0x620] ss:$20 sps:$4 sm:$0xff]  }
  0x94   :  { %1901 = vmatprep.subr.bf16.mxu1 %v5730_v26  ;;  %v5816_v26 = vld [vmem:[#allocation2 + $0x5fc] ss:$20 sps:$4 sm:$0xff]   ;;  %v5819_v27 = vld [vmem:[#allocation2 + $0x32c] ss:$20 sps:$4 sm:$0xff]  }
  0x96   :  { %1824 = vmatpush1.bf16.msra.mxu0 %v5731_v29  ;;  %v5817_v29 = vld [vmem:[#allocation2 + $0x328] ss:$20 sps:$4 sm:$0xff]  }
  0x97   :  { %1902 = vmatpush1.bf16.msra.mxu1 %v5728_v28  ;;  %1825 = vmatprep.subr.bf16.mxu0 %v5739_v31  ;;  %v5814_v28 = vld [vmem:[#allocation2 + $0x5f8] ss:$20 sps:$4 sm:$0xff]  }
  0x98   :  { %1903 = vmatprep.subr.bf16.mxu1 %v5736_v30  ;;  %v5822_v30 = vld [vmem:[#allocation2 + $0x5d4] ss:$20 sps:$4 sm:$0xff]   ;;  %v5825_v31 = vld [vmem:[#allocation2 + $0x304] ss:$20 sps:$4 sm:$0xff]  }
  0x9a   :  { %1826 = vmatpush1.bf16.msra.mxu0 %v5737_v35  ;;  %v5828_v35 = vld [vmem:[#allocation2 + $0x5ac] ss:$20 sps:$4 sm:$0xff]  }
  0x9b   :  { %1904 = vmatpush1.bf16.msra.mxu1 %v5734_v34  ;;  %1827 = vmatprep.subr.bf16.mxu0 %v5745_v37  ;;  %v5823_v34 = vld [vmem:[#allocation2 + $0x300] ss:$20 sps:$4 sm:$0xff]   ;;  %v5826_v37 = vld [vmem:[#allocation2 + $0x5a8] ss:$20 sps:$4 sm:$0xff]  }
  0x9c   :  { %1905 = vmatprep.subr.bf16.mxu1 %v5742_v36  ;;  %v5831_v36 = vld [vmem:[#allocation2 + $0x2dc] ss:$20 sps:$4 sm:$0xff]  }
  0x9e   :  { %1828 = vmatpush1.bf16.msra.mxu0 %v5743_v39  ;;  %v5834_v39 = vld [vmem:[#allocation2 + $0x584] ss:$20 sps:$4 sm:$0xff]  }
  0x9f   :  { %1906 = vmatpush1.bf16.msra.mxu1 %v5740_v38  ;;  %1829 = vmatprep.subr.bf16.mxu0 %v5751_v41  ;;  %v5829_v38 = vld [vmem:[#allocation2 + $0x2d8] ss:$20 sps:$4 sm:$0xff]   ;;  %v5832_v41 = vld [vmem:[#allocation2 + $0x580] ss:$20 sps:$4 sm:$0xff]  }
  0xa0   :  { %1907 = vmatprep.subr.bf16.mxu1 %v5748_v40  ;;  %v5837_v40 = vld [vmem:[#allocation2 + $0x2b4] ss:$20 sps:$4 sm:$0xff]  }
  0xa2   :  { %1830 = vmatpush2.bf16.msra.mxu0 %v5749_v43  ;;  %v5840_v43 = vld [vmem:[#allocation2 + $0x55c] ss:$20 sps:$4 sm:$0xff]  }
  0xa3   :  { %1908 = vmatpush1.bf16.msra.mxu1 %v5746_v42  ;;  %1831 = vmatprep.subr.bf16.mxu0 %v5757_v45  ;;  %v5835_v42 = vld [vmem:[#allocation2 + $0x2b0] ss:$20 sps:$4 sm:$0xff]   ;;  %v5838_v45 = vld [vmem:[#allocation2 + $0x558] ss:$20 sps:$4 sm:$0xff]  }
  0xa4   :  { %1909 = vmatprep.subr.bf16.mxu1 %v5754_v44  ;;  %v5843_v44 = vld [vmem:[#allocation2 + $0x28c] ss:$20 sps:$4 sm:$0xff]  }
  0xa6   :  { %1832 = vmatpush2.bf16.msra.mxu0 %v5755_v48  ;;  %v5846_v48 = vld [vmem:[#allocation2 + $0x534] ss:$20 sps:$4 sm:$0xff]  }
  0xa7   :  { %1910 = vmatpush1.bf16.msra.mxu1 %v5752_v46  ;;  %1833 = vmatprep.subr.bf16.mxu0 %v5763_v50  ;;  %v5841_v46 = vld [vmem:[#allocation2 + $0x288] ss:$20 sps:$4 sm:$0xff]   ;;  %v5844_v50 = vld [vmem:[#allocation2 + $0x530] ss:$20 sps:$4 sm:$0xff]  }
  0xa8   :  { %1911 = vmatprep.subr.bf16.mxu1 %v5760_v49  ;;  %v5849_v49 = vld [vmem:[#allocation2 + $0x4e4] ss:$20 sps:$4 sm:$0xff]  }
  0xaa   :  { %1834 = vmatpush2.bf16.msra.mxu0 %v5761_v53  ;;  %v5852_v53 = vld [vmem:[#allocation2 + $0x50c] ss:$20 sps:$4 sm:$0xff]  }
  0xab   :  { %1912 = vmatpush2.bf16.msra.mxu1 %v5758_v52  ;;  %1835 = vmatprep.subr.bf16.mxu0 %v5769_v55  ;;  %v5847_v52 = vld [vmem:[#allocation2 + $0x4e0] ss:$20 sps:$4 sm:$0xff]   ;;  %v5850_v55 = vld [vmem:[#allocation2 + $0x508] ss:$20 sps:$4 sm:$0xff]  }
  0xac   :  { %1913 = vmatprep.subr.bf16.mxu1 %v5766_v54  ;;  %v5855_v54 = vld [vmem:[#allocation2 + $0x4bc] ss:$20 sps:$4 sm:$0xff]  }
  0xae   :  { %1836 = vmatpush2.bf16.msra.mxu0 %v5767_v57  ;;  %v5858_v57 = vld [vmem:[#allocation2 + $0x764] ss:$20 sps:$4 sm:$0xff]  }
  0xaf   :  { %1914 = vmatpush2.bf16.msra.mxu1 %v5764_v56  ;;  %1837 = vmatprep.subr.bf16.mxu0 %v5775_v59  ;;  %v5853_v56 = vld [vmem:[#allocation2 + $0x4b8] ss:$20 sps:$4 sm:$0xff]   ;;  %v5856_v59 = vld [vmem:[#allocation2 + $0x760] ss:$20 sps:$4 sm:$0xff]  }
  0xb0   :  { %1915 = vmatprep.subr.bf16.mxu1 %v5772_v58  ;;  %v5861_v58 = vld [vmem:[#allocation2 + $0x494] ss:$20 sps:$4 sm:$0xff]  }
  0xb2   :  { %1838 = vmatpush2.bf16.msra.mxu0 %v5773_v61  ;;  %v5864_v61 = vld [vmem:[#allocation2 + $0x73c] ss:$20 sps:$4 sm:$0xff]  }
  0xb3   :  { %1916 = vmatpush2.bf16.msra.mxu1 %v5770_v60  ;;  %1839 = vmatprep.subr.bf16.mxu0 %v5781_v63  ;;  %v5859_v60 = vld [vmem:[#allocation2 + $0x490] ss:$20 sps:$4 sm:$0xff]   ;;  %v5862_v63 = vld [vmem:[#allocation2 + $0x738] ss:$20 sps:$4 sm:$0xff]  }
  0xb4   :  { %1917 = vmatprep.subr.bf16.mxu1 %v5778_v62  ;;  %v5867_v62 = vld [vmem:[#allocation2 + $0x46c] ss:$20 sps:$4 sm:$0xff]  }
  0xb6   :  { %1840 = vmatpush2.bf16.msra.mxu0 %v5779_v1  ;;  %v5870_v1 = vld [vmem:[#allocation2 + $0x714] ss:$20 sps:$4 sm:$0xff]  }
  0xb7   :  { %1918 = vmatpush2.bf16.msra.mxu1 %v5776_v0  ;;  %1841 = vmatprep.subr.bf16.mxu0 %v5787_v3  ;;  %v5865_v0 = vld [vmem:[#allocation2 + $0x468] ss:$20 sps:$4 sm:$0xff]   ;;  %v5868_v3 = vld [vmem:[#allocation2 + $0x710] ss:$20 sps:$4 sm:$0xff]  }
  0xb8   :  { %1919 = vmatprep.subr.bf16.mxu1 %v5784_v2  ;;  %v5873_v2 = vld [vmem:[#allocation2 + $0x444] ss:$20 sps:$4 sm:$0xff]  }
  0xba   :  { %1842 = vmatpush2.bf16.msra.mxu0 %v5785_v5  ;;  %v5876_v5 = vld [vmem:[#allocation2 + $0x6ec] ss:$20 sps:$4 sm:$0xff]  }
  0xbb   :  { %1920 = vmatpush2.bf16.msra.mxu1 %v5782_v4  ;;  %1843 = vmatprep.subr.bf16.mxu0 %v5793_v9  ;;  %v5871_v4 = vld [vmem:[#allocation2 + $0x440] ss:$20 sps:$4 sm:$0xff]   ;;  %v5874_v9 = vld [vmem:[#allocation2 + $0x6e8] ss:$20 sps:$4 sm:$0xff]  }
  0xbc   :  { %1921 = vmatprep.subr.bf16.mxu1 %v5790_v8  ;;  %v5879_v8 = vld [vmem:[#allocation2 + $0x41c] ss:$20 sps:$4 sm:$0xff]  }
  0xbe   :  { %1844 = vmatpush2.bf16.msra.mxu0 %v5791_v11  ;;  %v5882_v11 = vld [vmem:[#allocation2 + $0x6c4] ss:$20 sps:$4 sm:$0xff]  }
  0xbf   :  { %1922 = vmatpush2.bf16.msra.mxu1 %v5788_v10  ;;  %1936 = vmatprep.subr.bf16.mxu0 %v5801_v14  ;;  %v5877_v10 = vld [vmem:[#allocation2 + $0x418] ss:$20 sps:$4 sm:$0xff]   ;;  %v5880_v14 = vld [vmem:[#allocation2 + $0x6c0] ss:$20 sps:$4 sm:$0xff]  }
  0xc0   :  { %1923 = vmatprep.subr.bf16.mxu1 %v5798_v12  ;;  %v5885_v12 = vld [vmem:[#allocation2 + $0x3f4] ss:$20 sps:$4 sm:$0xff]  }
  0xc1   :  { %1846 = vmatmul.mubr.bf16.vlgmr.msra.gmra.mxu0 %v6661_v15 }
  0xc2   :  { %1937 = vmatpush1.bf16.msra.mxu0 %v5799_v17  ;;  %1968 = vmatprep.mubr.bf16.mxu0 %v6633_v51  ;;  %v5888_v17 = vld [vmem:[#allocation2 + $0x69c] ss:$20 sps:$4 sm:$0xff]  }
  0xc3   :  { %1924 = vmatpush2.bf16.msra.mxu1 %v5796_v16  ;;  %1938 = vmatprep.subr.bf16.mxu0 %v5807_v19  ;;  %v5883_v16 = vld [vmem:[#allocation2 + $0x3f0] ss:$20 sps:$4 sm:$0xff]   ;;  %v5886_v19 = vld [vmem:[#allocation2 + $0x698] ss:$20 sps:$4 sm:$0xff]  }
  0xc4   :  { %1925 = vmatprep.subr.bf16.mxu1 %v5804_v18  ;;  %v5891_v18 = vld [vmem:[#allocation2 + $0x3cc] ss:$20 sps:$4 sm:$0xff]  }
  0xc6   :  { %1939 = vmatpush1.bf16.msra.mxu0 %v5805_v21  ;;  %v5894_v21 = vld [vmem:[#allocation2 + $0x674] ss:$20 sps:$4 sm:$0xff]  }
  0xc7   :  { %1926 = vmatpush2.bf16.msra.mxu1 %v5802_v20  ;;  %1940 = vmatprep.subr.bf16.mxu0 %v5813_v23  ;;  %v5889_v20 = vld [vmem:[#allocation2 + $0x3c8] ss:$20 sps:$4 sm:$0xff]   ;;  %v5892_v23 = vld [vmem:[#allocation2 + $0x670] ss:$20 sps:$4 sm:$0xff]  }
  0xc8   :  { %1977 = vmatprep.subr.bf16.mxu1 %v5810_v22  ;;  %v5895_v22 = vld [vmem:[#allocation2 + $0x268] ss:$20 sps:$4 sm:$0xff]  }
  0xca   :  { %1928 = vmatmul.mubr.bf16.vlgmr.msra.gmra.mxu1 %v6637_v6  ;;  %1941 = vmatpush1.bf16.msra.mxu0 %v5811_v25  ;;  %v5899_v25 = vld [vmem:[#allocation2 + $0x64c] ss:$20 sps:$4 sm:$0xff]  }
  0xcb   :  { %1978 = vmatpush1.bf16.msra.mxu1 %v5808_v24  ;;  %1942 = vmatprep.subr.bf16.mxu0 %v5819_v27  ;;  %v5896_v24 = vld [vmem:[#allocation2 + $0x128] ss:$20 sps:$4 sm:$0xff]  }
  0xcc   :  { %1979 = vmatprep.subr.bf16.mxu1 %v5816_v26  ;;  %2009 = vmatprep.mubr.bf16.mxu1 %v6656_v33  ;;  %v5900_v26 = vld [vmem:[#allocation2 + $0x240] ss:$20 sps:$4 sm:$0xff]   ;;  %v5897_v27 = vld [vmem:[#allocation2 + $0x648] ss:$20 sps:$4 sm:$0xff]  }
  0xce   :  { %1943 = vmatpush1.bf16.msra.mxu0 %v5817_v29  ;;  %v5902_v29 = vld [vmem:[#allocation2 + $0x218] ss:$20 sps:$4 sm:$0xff]  }
  0xcf   :  { %1980 = vmatpush1.bf16.msra.mxu1 %v5814_v28  ;;  %1944 = vmatprep.subr.bf16.mxu0 %v5825_v31  ;;  %v5901_v28 = vld [vmem:[#allocation2 + $0x100] ss:$20 sps:$4 sm:$0xff]   ;;  %v5903_v31 = vld [vmem:[#allocation2 + $0xd8] ss:$20 sps:$4 sm:$0xff]  }
  0xd0   :  { %1981 = vmatprep.subr.bf16.mxu1 %v5822_v30  ;;  %v5906_v30 = vld [vmem:[#allocation2 + $0x78c] ss:$20 sps:$4 sm:$0xff]  }
  0xd2   :  { %1945 = vmatpush1.bf16.msra.mxu0 %v5823_v34  ;;  %v5907_v34 = vld [vmem:[#allocation2 + $0x1f0] ss:$20 sps:$4 sm:$0xff]  }
  0xd3   :  { %1982 = vmatpush1.bf16.msra.mxu1 %v5820_v32  ;;  %1946 = vmatprep.subr.bf16.mxu0 %v5831_v36  ;;  %v5904_v32 = vld [vmem:[#allocation2 + $0x788] ss:$20 sps:$4 sm:$0xff]   ;;  %v5908_v36 = vld [vmem:[#allocation2 + $0xb0] ss:$20 sps:$4 sm:$0xff]  }
  0xd4   :  { %1983 = vmatprep.subr.bf16.mxu1 %v5828_v35  ;;  %v5909_v35 = vld [vmem:[#allocation2 + $0x4e8] ss:$20 sps:$4 sm:$0xff]  }
  0xd6   :  { %1947 = vmatpush1.bf16.msra.mxu0 %v5829_v38  ;;  %v5910_v38 = vld [vmem:[#allocation2 + $0x3a8] ss:$20 sps:$4 sm:$0xff]  }
  0xd7   :  { %1984 = vmatpush1.bf16.msra.mxu1 %v5826_v37  ;;  %1948 = vmatprep.subr.bf16.mxu0 %v5837_v40  ;;  %v5911_v37 = vld [vmem:[#allocation2 + $0x1c8] ss:$20 sps:$4 sm:$0xff]   ;;  %v5915_v40 = vld [vmem:[#allocation2 + $0x1a0] ss:$20 sps:$4 sm:$0xff]  }
  0xd8   :  { %1985 = vmatprep.subr.bf16.mxu1 %v5834_v39  ;;  %v5913_v39 = vld [vmem:[#allocation2 + $0x4c0] ss:$20 sps:$4 sm:$0xff]  }
  0xda   :  { %1949 = vmatpush1.bf16.msra.mxu0 %v5835_v42  ;;  %v5914_v42 = vld [vmem:[#allocation2 + $0x380] ss:$20 sps:$4 sm:$0xff]  }
  0xdb   :  { %1986 = vmatpush1.bf16.msra.mxu1 %v5832_v41  ;;  %1950 = vmatprep.subr.bf16.mxu0 %v5843_v44  ;;  %v6674_v41 = vld [vmem:[%s6971_s0 + $0x18] ss:$0 sps:$4 sm:$0xff]   ;;  %s4858_s0 = sshll.u32 %s6549_s3, 4  ;;  %s4859_s0 = int_to_ptr.vmem [resolvable:$true] %s4858_s0 }
  0xdc   :  { %1987 = vmatprep.subr.bf16.mxu1 %v5840_v43  ;;  %v5916_v43 = vld [vmem:[#allocation2 + $0x60] ss:$20 sps:$4 sm:$0xff]   ;;  %v5917_v44 = vld [vmem:[#allocation2 + $0x498] ss:$20 sps:$4 sm:$0xff]   ;;  %s6507_s14 = scalar_lea.vmem %s4859_s0, 128  ;;  %p6512_p12 = scmp.lt.s32.totalorder %s4859_s0, %s4859_s0 }
  0xdd   :  { %p6508_p11 = scmp.ne.s32.totalorder %s4859_s0, %s6507_s14  ;;  %p6513_p13 = scmp.lt.s32.totalorder %s6507_s14, %s6507_s14 }
  0xde   :  { %1951 = vmatpush1.bf16.msra.mxu0 %v5841_v46  ;;  %v5918_v46 = vld [vmem:[#allocation2 + $0x358] ss:$20 sps:$4 sm:$0xff]  }
  0xdf   :  { %1988 = vmatpush1.bf16.msra.mxu1 %v5838_v45  ;;  %1952 = vmatprep.subr.bf16.mxu0 %v5849_v49  ;;  %v5919_v45 = vld [vmem:[#allocation2 + $0x178] ss:$20 sps:$4 sm:$0xff]   ;;  %v5921_v49 = vld [vmem:[#allocation2 + $0x470] ss:$20 sps:$4 sm:$0xff]   ;;  %p6514_p0 = por %p6513_p13, %p6512_p12 }
  0xe0   :  { %1989 = vmatprep.subr.bf16.mxu1 %v5846_v48  ;;  %v5920_v48 = vld [vmem:[#allocation2 + $0x38] ss:$20 sps:$4 sm:$0xff]  }
  0xe1   :  { %p6515_p1 = pnand %p6514_p0, %p6508_p11 }
  0xe2   :  { %1953 = vmatpush2.bf16.msra.mxu0 %v5847_v52  ;;  %v5922_v52 = vld [vmem:[#allocation2 + $0x330] ss:$20 sps:$4 sm:$0xff]  }
  0xe3   :  { %1990 = vmatpush1.bf16.msra.mxu1 %v5844_v50  ;;  %1954 = vmatprep.subr.bf16.mxu0 %v5855_v54  ;;  %v5923_v50 = vld [vmem:[#allocation2 + $0x150] ss:$20 sps:$4 sm:$0xff]   ;;  %v5925_v54 = vld [vmem:[#allocation2 + $0x448] ss:$20 sps:$4 sm:$0xff]  }
  0xe4   :  { %1991 = vmatprep.subr.bf16.mxu1 %v5852_v53  ;;  %v5924_v53 = vld [vmem:[#allocation2 + $0x10] ss:$20 sps:$4 sm:$0xff]  }
  0xe6   :  { %1955 = vmatpush2.bf16.msra.mxu0 %v5853_v56  ;;  %v5926_v56 = vld [vmem:[#allocation2 + $0x308] ss:$20 sps:$4 sm:$0xff]  }
  0xe7   :  { %1992 = vmatpush1.bf16.msra.mxu1 %v5850_v55  ;;  %1956 = vmatprep.subr.bf16.mxu0 %v5861_v58  ;;  %v5927_v55 = vld [vmem:[#allocation2 + $0x768] ss:$20 sps:$4 sm:$0xff]   ;;  %v5929_v58 = vld [vmem:[#allocation2 + $0x420] ss:$20 sps:$4 sm:$0xff]  }
  0xe8   :  { %1993 = vmatprep.subr.bf16.mxu1 %v5858_v57  ;;  %v5928_v57 = vld [vmem:[#allocation2 + $0x628] ss:$20 sps:$4 sm:$0xff]  }
  0xea   :  { %1957 = vmatpush2.bf16.msra.mxu0 %v5859_v60  ;;  %v5932_v60 = vld [vmem:[#allocation2 + $0x600] ss:$20 sps:$4 sm:$0xff]  }
  0xeb   :  { %1994 = vmatpush2.bf16.msra.mxu1 %v5856_v59  ;;  %1958 = vmatprep.subr.bf16.mxu0 %v5867_v62  ;;  %v5931_v59 = vld [vmem:[#allocation2 + $0x740] ss:$20 sps:$4 sm:$0xff]   ;;  %v5935_v62 = vld [vmem:[#allocation2 + $0x718] ss:$20 sps:$4 sm:$0xff]  }
  0xec   :  { %1995 = vmatprep.subr.bf16.mxu1 %v5864_v61  ;;  %v5933_v61 = vld [vmem:[#allocation2 + $0x3f8] ss:$20 sps:$4 sm:$0xff]  }
  0xee   :  { %1959 = vmatpush2.bf16.msra.mxu0 %v5865_v0  ;;  %v5936_v0 = vld [vmem:[#allocation2 + $0x5d8] ss:$20 sps:$4 sm:$0xff]  }
  0xef   :  { %1996 = vmatpush2.bf16.msra.mxu1 %v5862_v63  ;;  %1960 = vmatprep.subr.bf16.mxu0 %v5873_v2  ;;  %v5934_v63 = vld [vmem:[#allocation2 + $0x2b8] ss:$20 sps:$4 sm:$0xff]   ;;  %v5939_v2 = vld [vmem:[#allocation2 + $0x6f0] ss:$20 sps:$4 sm:$0xff]  }
  0xf0   :  { %1997 = vmatprep.subr.bf16.mxu1 %v5870_v1  ;;  %v5937_v1 = vld [vmem:[#allocation2 + $0x3d0] ss:$20 sps:$4 sm:$0xff]  }
  0xf2   :  { %1961 = vmatpush2.bf16.msra.mxu0 %v5871_v4  ;;  %v5940_v4 = vld [vmem:[#allocation2 + $0x5b0] ss:$20 sps:$4 sm:$0xff]  }
  0xf3   :  { %1998 = vmatpush2.bf16.msra.mxu1 %v5868_v3  ;;  %1962 = vmatprep.subr.bf16.mxu0 %v5879_v8  ;;  %v5938_v3 = vld [vmem:[#allocation2 + $0x290] ss:$20 sps:$4 sm:$0xff]  }
  0xf4   :  { %1999 = vmatprep.subr.bf16.mxu1 %v5876_v5  ;;  %v5941_v5 = vld [vmem:[#allocation2 + $0x6c8] ss:$20 sps:$4 sm:$0xff]   ;;  %v5949_v8 = vld [vmem:[#allocation2 + $0x790] ss:$20 sps:$4 sm:$0xff]  }
  0xf6   :  { %1963 = vmatpush2.bf16.msra.mxu0 %v5877_v10  ;;  %v5952_v10 = vld [vmem:[#allocation5 + $0xe4] ss:$16 sps:$4 sm:$0xff]  }
  0xf7   :  { %2000 = vmatpush2.bf16.msra.mxu1 %v5874_v9  ;;  %1964 = vmatprep.subr.bf16.mxu0 %v5885_v12  ;;  %v5943_v9 = vld [vmem:[#allocation2 + $0x6a0] ss:$20 sps:$4 sm:$0xff]   ;;  %v5945_v12 = vld [vmem:[#allocation2 + $0x678] ss:$20 sps:$4 sm:$0xff]  }
  0xf8   :  { %2001 = vmatprep.subr.bf16.mxu1 %v5882_v11  ;;  %v5944_v11 = vld [vmem:[#allocation2 + $0x560] ss:$20 sps:$4 sm:$0xff]  }
  0xfa   :  { %1965 = vmatpush2.bf16.msra.mxu0 %v5883_v16  ;;  %v5950_v16 = vld [vmem:[#allocation5 + $0xe0] ss:$16 sps:$4 sm:$0xff]  }
  0xfb   :  { %2002 = vmatpush2.bf16.msra.mxu1 %v5880_v14  ;;  %1966 = vmatprep.subr.bf16.mxu0 %v5891_v18  ;;  %v5946_v14 = vld [vmem:[#allocation2 + $0x538] ss:$20 sps:$4 sm:$0xff]  }
  0xfc   :  { %2003 = vmatprep.subr.bf16.mxu1 %v5888_v17  ;;  %v5947_v17 = vld [vmem:[#allocation2 + $0x650] ss:$20 sps:$4 sm:$0xff]   ;;  %v5955_v18 = vld [vmem:[#allocation5 + $0xc4] ss:$16 sps:$4 sm:$0xff]  }
  0xfe   :  { %1967 = vmatpush2.bf16.msra.mxu0 %v5889_v20  ;;  %v5953_v20 = vld [vmem:[#allocation5 + $0xc0] ss:$16 sps:$4 sm:$0xff]  }
  0xff   :  { %2004 = vmatpush2.bf16.msra.mxu1 %v5886_v19  ;;  %5445 = vmatprep.subr.bf16.mxu0 %v5895_v22  ;;  %v5948_v19 = vld [vmem:[#allocation2 + $0x510] ss:$20 sps:$4 sm:$0xff]   ;;  %v5956_v22 = vld [vmem:[#allocation5 + $0xa0] ss:$16 sps:$4 sm:$0xff]  }
 0x100   :  { %2005 = vmatprep.subr.bf16.mxu1 %v5894_v21  ;;  %v5958_v21 = vld [vmem:[#allocation5 + $0xa4] ss:$16 sps:$4 sm:$0xff]  }
 0x101   :  { %1969 = vmatmul.mubr.bf16.vlgmr.msra.gmra.mxu0 %v6639_v7 }
 0x102   :  { %5446 = vmatpush3.bf16.msra.mxu0 %v5896_v24  ;;  %2091 = vmatprep.mubr.bf16.mxu0 %v6628_v47  ;;  %v5912_v47 = vld [vmem:[#allocation2 + $0x88] ss:$20 sps:$4 sm:$0xff]  }
 0x103   :  { %2006 = vmatpush2.bf16.msra.mxu1 %v5892_v23  ;;  %5447 = vmatprep.subr.bf16.mxu0 %v5900_v26  ;;  %v5998_v23 = vld [vmem:[#allocation5 + $0x2e0] ss:$16 sps:$4 sm:$0xff]   ;;  %v5961_v24 = vld [vmem:[#allocation5 + $0x84] ss:$16 sps:$4 sm:$0xff]  }
 0x104   :  { %2007 = vmatprep.subr.bf16.mxu1 %v5899_v25  ;;  %v6003_v25 = vld [vmem:[#allocation5 + $0x2c4] ss:$16 sps:$4 sm:$0xff]   ;;  %v5959_v26 = vld [vmem:[#allocation5 + $0x80] ss:$16 sps:$4 sm:$0xff]  }
 0x106   :  { %5448 = vmatpush3.bf16.msra.mxu0 %v5901_v28 }
 0x107   :  { %2008 = vmatpush2.bf16.msra.mxu1 %v5897_v27  ;;  %5449 = vmatprep.subr.bf16.mxu0 %v5902_v29  ;;  %v5964_v29 = vld [vmem:[#allocation5 + $0x64] ss:$16 sps:$4 sm:$0xff]  }
 0x108   :  { %2032 = vmatprep.subr.bf16.mxu1 %v5906_v30  ;;  %v6001_v30 = vld [vmem:[#allocation5 + $0x2c0] ss:$16 sps:$4 sm:$0xff]  }
 0x10a   :  { %2010 = vmatmul.mubr.bf16.vlgmr.msra.gmra.mxu1 %v6661_v15  ;;  %5450 = vmatpush3.bf16.msra.mxu0 %v5903_v31  ;;  %v6006_v31 = vld [vmem:[#allocation5 + $0x2a4] ss:$16 sps:$4 sm:$0xff]  }
 0x10b   :  { %2033 = vmatpush1.bf16.msra.mxu1 %v5904_v32  ;;  %5451 = vmatprep.subr.bf16.mxu0 %v5907_v34 }
 0x10c   :  { %2050 = vmatprep.mubr.bf16.mxu1 %v6546_v13  ;;  %5467 = vmatprep.subr.bf16.mxu1 %v5909_v35  ;;  %v5962_v35 = vld [vmem:[#allocation5 + $0x60] ss:$16 sps:$4 sm:$0xff]  }
 0x10e   :  { %5452 = vmatpush3.bf16.msra.mxu0 %v5908_v36 }
 0x10f   :  { %5453 = vmatprep.subr.bf16.mxu0 %v5911_v37 }
 0x112   :  { %5122 = vmatmul.mubr.msk.bf16.vlgmr.msra.gmra.mxu1 %vm1727_vm0, %v6674_v41  ;;  %5454 = vmatpush3.bf16.msra.mxu0 %v5912_v47  ;;  %v6004_v47 = vld [vmem:[#allocation5 + $0x2a0] ss:$16 sps:$4 sm:$0xff]  }
 0x113   :  { %5468 = vmatpush3.bf16.msra.mxu1 %v5910_v38  ;;  %5455 = vmatprep.subr.bf16.mxu0 %v5915_v40  ;;  %v5967_v38 = vld [vmem:[#allocation5 + $0x44] ss:$16 sps:$4 sm:$0xff]  }
 0x114   :  { %5469 = vmatprep.subr.bf16.mxu1 %v5913_v39  ;;  %2131 = vmatprep.mubr.bf16.mxu1 %v6633_v51  ;;  %v5930_v51 = vld [vmem:[#allocation2 + $0x2e0] ss:$20 sps:$4 sm:$0xff]   ;;  %v6009_v39 = vld [vmem:[#allocation5 + $0x284] ss:$16 sps:$4 sm:$0xff]  }
 0x116   :  { %5456 = vmatpush3.bf16.msra.mxu0 %v5916_v43  ;;  %v5970_v43 = vld [vmem:[#allocation5 + $0x24] ss:$16 sps:$4 sm:$0xff]  }
 0x117   :  { %5470 = vmatpush3.bf16.msra.mxu1 %v5914_v42  ;;  %5457 = vmatprep.subr.bf16.mxu0 %v5919_v45  ;;  %v6012_v45 = vld [vmem:[#allocation5 + $0x264] ss:$16 sps:$4 sm:$0xff]  }
 0x118   :  { %5471 = vmatprep.subr.bf16.mxu1 %v5917_v44  ;;  %v6007_v44 = vld [vmem:[#allocation5 + $0x280] ss:$16 sps:$4 sm:$0xff]  }
 0x11a   :  { %5458 = vmatpush3.bf16.msra.mxu0 %v5920_v48  ;;  %v5968_v48 = vld [vmem:[#allocation5 + $0x20] ss:$16 sps:$4 sm:$0xff]  }
 0x11b   :  { %5472 = vmatpush3.bf16.msra.mxu1 %v5918_v46  ;;  %5459 = vmatprep.subr.bf16.mxu0 %v5923_v50  ;;  %v5973_v50 = vld [vmem:[#allocation5 + $0x4] ss:$16 sps:$4 sm:$0xff]  }
 0x11c   :  { %5473 = vmatprep.subr.bf16.mxu1 %v5921_v49 }
 0x11e   :  { %5460 = vmatpush3.bf16.msra.mxu0 %v5924_v53  ;;  %v6015_v53 = vld [vmem:[#allocation5 + $0x244] ss:$16 sps:$4 sm:$0xff]  }
 0x11f   :  { %5474 = vmatpush3.bf16.msra.mxu1 %v5922_v52  ;;  %5489 = vmatprep.subr.bf16.mxu0 %v5927_v55  ;;  %v6010_v52 = vld [vmem:[#allocation5 + $0x260] ss:$16 sps:$4 sm:$0xff]  }
 0x120   :  { %5475 = vmatprep.subr.bf16.mxu1 %v5925_v54  ;;  %v5971_v55 = vld [vmem:[#allocation5] ss:$16 sps:$4 sm:$0xff]  }
 0x121   :  { %2092 = vmatmul.mubr.bf16.vlgmr.msra.gmra.mxu0 %v6637_v6  ;;  %v5942_v6 = vld [vmem:[#allocation2 + $0x588] ss:$20 sps:$4 sm:$0xff]  }
 0x122   :  { %5490 = vmatpush3.bf16.msra.mxu0 %v5928_v57  ;;  %2171 = vmatprep.mubr.bf16.mxu0 %v6656_v33  ;;  %v6547_v33 = vmov 0.0   ;;  %v6013_v57 = vld [vmem:[#allocation5 + $0x240] ss:$16 sps:$4 sm:$0xff]  }
 0x123   :  { %5476 = vmatpush3.bf16.msra.mxu1 %v5926_v56  ;;  %5491 = vmatprep.subr.bf16.mxu0 %v5931_v59  ;;  %v5976_v56 = vld [vmem:[#allocation5 + $0x1e4] ss:$16 sps:$4 sm:$0xff]   ;;  %v5974_v59 = vld [vmem:[#allocation5 + $0x1e0] ss:$16 sps:$4 sm:$0xff]  }
 0x124   :  { %5477 = vmatprep.subr.bf16.mxu1 %v5929_v58  ;;  %v6018_v58 = vld [vmem:[#allocation5 + $0x224] ss:$16 sps:$4 sm:$0xff]  }
 0x126   :  { %5492 = vmatpush3.bf16.msra.mxu0 %v5932_v60  ;;  %v6016_v60 = vld [vmem:[#allocation5 + $0x220] ss:$16 sps:$4 sm:$0xff]  }
 0x127   :  { %5478 = vmatpush3.bf16.msra.mxu1 %v5930_v51  ;;  %5493 = vmatprep.subr.bf16.mxu0 %v5935_v62  ;;  %v5979_v51 = vld [vmem:[#allocation5 + $0x1c4] ss:$16 sps:$4 sm:$0xff]   ;;  %v5977_v62 = vld [vmem:[#allocation5 + $0x1c0] ss:$16 sps:$4 sm:$0xff]  }
 0x128   :  { %5479 = vmatprep.subr.bf16.mxu1 %v5933_v61  ;;  %v6021_v61 = vld [vmem:[#allocation5 + $0x204] ss:$16 sps:$4 sm:$0xff]  }
 0x12a   :  { %5494 = vmatpush3.bf16.msra.mxu0 %v5936_v0  ;;  %v6019_v0 = vld [vmem:[#allocation5 + $0x200] ss:$16 sps:$4 sm:$0xff]  }
 0x12b   :  { %5480 = vmatpush3.bf16.msra.mxu1 %v5934_v63  ;;  %5495 = vmatprep.subr.bf16.mxu0 %v5939_v2  ;;  %v5982_v63 = vld [vmem:[#allocation5 + $0x1a4] ss:$16 sps:$4 sm:$0xff]   ;;  %v5980_v2 = vld [vmem:[#allocation5 + $0x1a0] ss:$16 sps:$4 sm:$0xff]  }
 0x12c   :  { %5481 = vmatprep.subr.bf16.mxu1 %v5937_v1  ;;  %v6024_v1 = vld [vmem:[#allocation5 + $0x3e4] ss:$16 sps:$4 sm:$0xff]  }
 0x12e   :  { %5496 = vmatpush3.bf16.msra.mxu0 %v5940_v4  ;;  %v5985_v4 = vld [vmem:[#allocation5 + $0x184] ss:$16 sps:$4 sm:$0xff]  }
 0x12f   :  { %5482 = vmatpush3.bf16.msra.mxu1 %v5938_v3  ;;  %5497 = vmatprep.subr.bf16.mxu0 %v5941_v5  ;;  %v6022_v3 = vld [vmem:[#allocation5 + $0x3e0] ss:$16 sps:$4 sm:$0xff]   ;;  %v6027_v5 = vld [vmem:[#allocation5 + $0x3c4] ss:$16 sps:$4 sm:$0xff]  }
 0x130   :  { %5579 = vmatprep.subr.bf16.mxu1 %v6547_v33 }
 0x132   :  { %2132 = vmatmul.mubr.bf16.vlgmr.msra.gmra.mxu1 %v6639_v7  ;;  %5498 = vmatpush3.bf16.msra.mxu0 %v5942_v6  ;;  %v6000_v7 = vld [vmem:[#allocation5 + $0x2e4] ss:$16 sps:$4 sm:$0xff]   ;;  %v5983_v6 = vld [vmem:[#allocation5 + $0x180] ss:$16 sps:$4 sm:$0xff]  }
 0x133   :  { %5580 = vmatpush3.bf16.msra.mxu1 %v5949_v8  ;;  %5499 = vmatprep.subr.bf16.mxu0 %v5943_v9  ;;  %v5988_v8 = vld [vmem:[#allocation5 + $0x164] ss:$16 sps:$4 sm:$0xff]   ;;  %v6025_v9 = vld [vmem:[#allocation5 + $0x3c0] ss:$16 sps:$4 sm:$0xff]  }
 0x134   :  { %5581 = vmatprep.mubr.msk.bf16.mxu1 %vm6548_vm1, %v6547_v33  ;;  %3211 = vmatprep.subr.bf16.mxu1 %v5952_v10  ;;  %v6030_v10 = vld [vmem:[#allocation5 + $0x3a4] ss:$16 sps:$4 sm:$0xff]   ;;  %v5986_v33 = vld [vmem:[#allocation5 + $0x160] ss:$16 sps:$4 sm:$0xff]  }
 0x136   :  { %5500 = vmatpush3.bf16.msra.mxu0 %v5944_v11  ;;  %v5991_v11 = vld [vmem:[#allocation5 + $0x144] ss:$16 sps:$4 sm:$0xff]  }
 0x137   :  { %5501 = vmatprep.subr.bf16.mxu0 %v5945_v12  ;;  %v6028_v12 = vld [vmem:[#allocation5 + $0x3a0] ss:$16 sps:$4 sm:$0xff]  }
 0x13a   :  { %5582 = vmatmul.mubr.msk.bf16.vlgmr.msra.gmra.mxu1 %vm1727_vm0, %v6674_v41  ;;  %5502 = vmatpush3.bf16.msra.mxu0 %v5946_v14  ;;  %v5965_v41 = vld [vmem:[#allocation5 + $0x40] ss:$16 sps:$4 sm:$0xff]   ;;  %v6033_v14 = vld [vmem:[#allocation5 + $0x384] ss:$16 sps:$4 sm:$0xff]  }
 0x13b   :  { %3212 = vmatpush1.bf16.msra.mxu1 %v5950_v16  ;;  %5503 = vmatprep.subr.bf16.mxu0 %v5947_v17  ;;  %v5989_v16 = vld [vmem:[#allocation5 + $0x140] ss:$16 sps:$4 sm:$0xff]  }
 0x13c   :  { %3213 = vmatprep.subr.bf16.mxu1 %v5955_v18  ;;  %v6031_v17 = vld [vmem:[#allocation5 + $0x380] ss:$16 sps:$4 sm:$0xff]   ;;  %v5994_v18 = vld [vmem:[#allocation5 + $0x124] ss:$16 sps:$4 sm:$0xff]  }
 0x13e   :  { %5504 = vmatpush3.bf16.msra.mxu0 %v5948_v19  ;;  %v6036_v19 = vld [vmem:[#allocation5 + $0x364] ss:$16 sps:$4 sm:$0xff]  }
 0x13f   :  { %3214 = vmatpush1.bf16.msra.mxu1 %v5953_v20  ;;  %3252 = vmatprep.subr.bf16.mxu0 %v6000_v7  ;;  %v404_v20 = vlaneseq  ;;  %v6034_v7 = vld [vmem:[#allocation5 + $0x360] ss:$16 sps:$4 sm:$0xff]  }
 0x140   :  { %3215 = vmatprep.subr.bf16.mxu1 %v5958_v21  ;;  %v5992_v21 = vld [vmem:[#allocation5 + $0x120] ss:$16 sps:$4 sm:$0xff]  }
 0x141   :  { %v6684_v27 = vpop.f32.mrf.mxu0  ;;  %2172 = vmatmul.mubr.bf16.vlgmr.msra.gmra.mxu0 %v6661_v15 }
 0x142   :  { %v6687_v28 = vpop.f32.mrf.mxu1  ;;  %3253 = vmatpush1.bf16.msra.mxu0 %v5998_v23  ;;  %v6039_v23 = vld [vmem:[#allocation5 + $0x344] ss:$16 sps:$4 sm:$0xff]  }
 0x143   :  { %3216 = vmatpush1.bf16.msra.mxu1 %v5956_v22  ;;  %v6689_v32 = vpop.f32.mrf.mxu0  ;;  %3254 = vmatprep.subr.bf16.mxu0 %v6003_v25  ;;  %v5997_v22 = vld [vmem:[#allocation5 + $0x104] ss:$16 sps:$4 sm:$0xff]   ;;  %v5995_v25 = vld [vmem:[#allocation5 + $0x100] ss:$16 sps:$4 sm:$0xff]  }
 0x144   :  { %v6691_v34 = vpop.f32.mrf.mxu1  ;;  %3217 = vmatprep.subr.bf16.mxu1 %v5961_v24  ;;  %v6697_v24 = vshrl.u32 %v404_v20, 7 }
 0x145   :  { %v1769_v36 = vpop.f32.mrf.mxu0 }
 0x146   :  { %v1810_v37 = vpop.f32.mrf.mxu1  ;;  %3255 = vmatpush1.bf16.msra.mxu0 %v6001_v30  ;;  %v6063_v30 = vld [vmem:[#allocation5 + $0x4e4] ss:$16 sps:$4 sm:$0xff]   ;;  %v6708_v36 = vsub.s32 1, %v6697_v24 }
 0x147   :  { %3218 = vmatpush1.bf16.msra.mxu1 %v5959_v26  ;;  %v1770_v15 = vpop.f32.mrf.mxu0  ;;  %3256 = vmatprep.subr.bf16.mxu0 %v6006_v31  ;;  %v6037_v26 = vld [vmem:[#allocation5 + $0x340] ss:$16 sps:$4 sm:$0xff]   ;;  %v6700_v31 = vsub.s32 0, %v6697_v24 }
 0x148   :  { %v1811_v40 = vpop.f32.mrf.mxu1  ;;  %3219 = vmatprep.subr.bf16.mxu1 %v5964_v29  ;;  %v6042_v29 = vld [vmem:[#allocation5 + $0x324] ss:$16 sps:$4 sm:$0xff]   ;;  %v6040_v37 = vld [vmem:[#allocation5 + $0x320] ss:$16 sps:$4 sm:$0xff]   ;;  %v6048_v15 = vld [vmem:[#allocation5 + $0xec] ss:$16 sps:$4 sm:$0xff]  }
 0x14a   :  { %v6693_v42 = vpop.f32.mrf.mxu1  ;;  %3257 = vmatpush1.bf16.msra.mxu0 %v6004_v47 }
 0x14b   :  { %3220 = vmatpush1.bf16.msra.mxu1 %v5962_v35  ;;  %3258 = vmatprep.subr.bf16.mxu0 %v6009_v39  ;;  %v6705_v35 = vld [vmem:[%s6973_s2] sm:$0x1f]  ;;  %v6043_v39 = vld [vmem:[#allocation5 + $0x300] ss:$16 sps:$4 sm:$0xff]  }
 0x14c   :  { %v6695_v46 = vpop.f32.mrf.mxu1  ;;  %3221 = vmatprep.subr.bf16.mxu1 %v5967_v38  ;;  %v6045_v38 = vld [vmem:[#allocation5 + $0x304] ss:$16 sps:$4 sm:$0xff]   ;;  %v407_v47 = vrot.slane %v6705_v35, %v6700_v31  ;;  %v411_v40 = vrot.slane %v6705_v35, %v6708_v36 }
 0x14e   :  { %v1892_v49 = vpop.f32.mrf.mxu1  ;;  %3259 = vmatpush1.bf16.msra.mxu0 %v6007_v44 }
 0x14f   :  { %3222 = vmatpush1.bf16.msra.mxu1 %v5965_v41  ;;  %3260 = vmatprep.subr.bf16.mxu0 %v6012_v45  ;;  %v1766_v41 = vadd.f32 %v6684_v27, %v407_v47 }
 0x150   :  { %v1893_v54 = vpop.f32.mrf.mxu1  ;;  %3223 = vmatprep.subr.bf16.mxu1 %v5970_v43  ;;  %v1768_v43 = vadd.f32 %v6689_v32, %v411_v40 }
 0x151   :  { %v1807_v44 = vadd.f32 %v6687_v28, %v1766_v41 }
 0x152   :  { %3261 = vmatpush1.bf16.msra.mxu0 %v6010_v52 }
 0x153   :  { %3224 = vmatpush1.bf16.msra.mxu1 %v5968_v48  ;;  %3262 = vmatprep.subr.bf16.mxu0 %v6015_v53  ;;  %v1809_v48 = vadd.f32 %v6691_v34, %v1768_v43 }
 0x154   :  { %3225 = vmatprep.subr.bf16.mxu1 %v5973_v50 }
 0x156   :  { %3263 = vmatpush1.bf16.msra.mxu0 %v6013_v57 }
 0x157   :  { %3226 = vmatpush1.bf16.msra.mxu1 %v5971_v55  ;;  %3264 = vmatprep.subr.bf16.mxu0 %v6018_v58 }
 0x158   :  { %3227 = vmatprep.subr.bf16.mxu1 %v5976_v56 }
 0x15a   :  { %3265 = vmatpush1.bf16.msra.mxu0 %v6016_v60 }
 0x15b   :  { %3228 = vmatpush2.bf16.msra.mxu1 %v5974_v59  ;;  %3266 = vmatprep.subr.bf16.mxu0 %v6021_v61  ;;  %v6061_v59 = vld [vmem:[#allocation5 + $0x4e0] ss:$16 sps:$4 sm:$0xff]   ;;  %v6075_v61 = vld [vmem:[#allocation5 + $0x4a4] ss:$16 sps:$4 sm:$0xff]  }
 0x15c   :  { %3229 = vmatprep.subr.bf16.mxu1 %v5979_v51  ;;  %v6069_v51 = vld [vmem:[#allocation5 + $0x4c4] ss:$16 sps:$4 sm:$0xff]  }
 0x15e   :  { %3267 = vmatpush1.bf16.msra.mxu0 %v6019_v0  ;;  %v6079_v0 = vld [vmem:[#allocation5 + $0x480] ss:$16 sps:$4 sm:$0xff]  }
 0x15f   :  { %3230 = vmatpush2.bf16.msra.mxu1 %v5977_v62  ;;  %3268 = vmatprep.subr.bf16.mxu0 %v6024_v1  ;;  %v6073_v62 = vld [vmem:[#allocation5 + $0x4a0] ss:$16 sps:$4 sm:$0xff]   ;;  %v6087_v1 = vld [vmem:[#allocation5 + $0x464] ss:$16 sps:$4 sm:$0xff]  }
 0x160   :  { %3231 = vmatprep.subr.bf16.mxu1 %v5982_v63  ;;  %v6081_v63 = vld [vmem:[#allocation5 + $0x484] ss:$16 sps:$4 sm:$0xff]  }
 0x162   :  { %3269 = vmatpush2.bf16.msra.mxu0 %v6022_v3  ;;  %v6093_v3 = vld [vmem:[#allocation5 + $0x444] ss:$16 sps:$4 sm:$0xff]  }
 0x163   :  { %3232 = vmatpush2.bf16.msra.mxu1 %v5980_v2  ;;  %3270 = vmatprep.subr.bf16.mxu0 %v6027_v5  ;;  %v6085_v2 = vld [vmem:[#allocation5 + $0x460] ss:$16 sps:$4 sm:$0xff]   ;;  %v6099_v5 = vld [vmem:[#allocation5 + $0x424] ss:$16 sps:$4 sm:$0xff]  }
 0x164   :  { %3233 = vmatprep.subr.bf16.mxu1 %v5985_v4  ;;  %v6091_v4 = vld [vmem:[#allocation5 + $0x440] ss:$16 sps:$4 sm:$0xff]  }
 0x166   :  { %3271 = vmatpush2.bf16.msra.mxu0 %v6025_v9  ;;  %v6103_v9 = vld [vmem:[#allocation5 + $0x400] ss:$16 sps:$4 sm:$0xff]  }
 0x167   :  { %3234 = vmatpush2.bf16.msra.mxu1 %v5983_v6  ;;  %3272 = vmatprep.subr.bf16.mxu0 %v6030_v10  ;;  %v6097_v6 = vld [vmem:[#allocation5 + $0x420] ss:$16 sps:$4 sm:$0xff]   ;;  %v6114_v10 = vld [vmem:[#allocation5 + $0x2ec] ss:$16 sps:$4 sm:$0xff]  }
 0x168   :  { %3235 = vmatprep.subr.bf16.mxu1 %v5988_v8  ;;  %v6105_v8 = vld [vmem:[#allocation5 + $0x404] ss:$16 sps:$4 sm:$0xff]  }
 0x16a   :  { %3273 = vmatpush2.bf16.msra.mxu0 %v6028_v12  ;;  %v6728_v12 = vsub.s32 2, %v6697_v24 }
 0x16b   :  { %3236 = vmatpush2.bf16.msra.mxu1 %v5986_v33  ;;  %3274 = vmatprep.subr.bf16.mxu0 %v6033_v14 }
 0x16c   :  { %3237 = vmatprep.subr.bf16.mxu1 %v5991_v11 }
 0x16e   :  { %3275 = vmatpush2.bf16.msra.mxu0 %v6031_v17 }
 0x16f   :  { %3238 = vmatpush2.bf16.msra.mxu1 %v5989_v16  ;;  %3276 = vmatprep.subr.bf16.mxu0 %v6036_v19  ;;  %v418_v16 = vsub.s32 3, %v6697_v24 }
 0x170   :  { %3239 = vmatprep.subr.bf16.mxu1 %v5994_v18  ;;  %v415_v18 = vrot.slane %v6705_v35, %v6728_v12 }
 0x171   :  { %v419_v20 = vrot.slane %v6705_v35, %v418_v16 }
 0x172   :  { %3277 = vmatpush2.bf16.msra.mxu0 %v6034_v7 }
 0x173   :  { %3240 = vmatpush2.bf16.msra.mxu1 %v5992_v21  ;;  %3278 = vmatprep.subr.bf16.mxu0 %v6039_v23 }
 0x174   :  { %3241 = vmatprep.subr.bf16.mxu1 %v5997_v22 }
 0x176   :  { %3279 = vmatpush2.bf16.msra.mxu0 %v6037_v26 }
 0x177   :  { %3242 = vmatpush2.bf16.msra.mxu1 %v5995_v25  ;;  %3280 = vmatprep.subr.bf16.mxu0 %v6042_v29 }
 0x178   :  { %3293 = vmatprep.subr.bf16.mxu1 %v6063_v30 }
 0x17a   :  { %3281 = vmatpush2.bf16.msra.mxu0 %v6040_v37 }
 0x17b   :  { %3282 = vmatprep.subr.bf16.mxu0 %v6045_v38 }
 0x17e   :  { %3283 = vmatpush2.bf16.msra.mxu0 %v6043_v39 }
 0x17f   :  { %3334 = vmatprep.subr.bf16.mxu0 %v6048_v15 }
 0x181   :  { %v1847_v45 = vpop.f32.mrf.mxu0 }
 0x182   :  { %v1848_v49 = vadd.f32 %v1847_v45, %v1807_v44 }
 0x183   :  { %v1849_v50 = vpop.f32.mrf.mxu0 }
 0x184   :  { %v1889_v52 = vadd.f32 %v6693_v42, %v1848_v49  ;;  %v1850_v53 = vadd.f32 %v1849_v50, %v1809_v48  ;;  %v6067_v42 = vld [vmem:[#allocation5 + $0x4c0] ss:$16 sps:$4 sm:$0xff]   ;;  %v6046_v48 = vld [vmem:[#allocation5 + $0xe8] ss:$16 sps:$4 sm:$0xff]   ;;  %v6051_v50 = vld [vmem:[#allocation5 + $0xcc] ss:$16 sps:$4 sm:$0xff]  }
 0x185   :  { %v1851_v54 = vpop.f32.mrf.mxu0 }
 0x186   :  { %v2219_v55 = vmax.f32 %v1889_v52, 0.0  ;;  %v1891_v56 = vadd.f32 %v6695_v46, %v1850_v53  ;;  %v6049_v52 = vld [vmem:[#allocation5 + $0xc8] ss:$16 sps:$4 sm:$0xff]   ;;  %v6054_v53 = vld [vmem:[#allocation5 + $0xac] ss:$16 sps:$4 sm:$0xff]  }
 0x187   :  { %v1852_v57 = vpop.f32.mrf.mxu0  ;;  %v6052_v54 = vld [vmem:[#allocation5 + $0xa8] ss:$16 sps:$4 sm:$0xff]  }
 0x188   :  { %v2220_v27 = vmax.f32 %v1891_v56, 0.0  ;;  %v6722_v28 = vpack.c.bf16 %v2219_v55, %v2219_v55  ;;  %v6057_v56 = vld [vmem:[#allocation5 + $0x8c] ss:$16 sps:$4 sm:$0xff]  }
 0x18a   :  { %v1929_v58 = vpop.f32.mrf.mxu1  ;;  %v6720_v32 = vpack.c.bf16 %v2220_v27, %v2220_v27  ;;  %v6055_v27 = vld [vmem:[#allocation5 + $0x88] ss:$16 sps:$4 sm:$0xff]  }
 0x18b   :  { %v1930_v7 = vadd.f32 %v1929_v58, %v415_v18 }
 0x18c   :  { %v1931_v60 = vpop.f32.mrf.mxu1  ;;  %3243 = vmatprep.mubr.bf16.mxu1 %v6720_v32 }
 0x18d   :  { %3244 = vmatmul.mubr.bf16.vlgmr.msra.gmra.mxu1 %v6722_v28  ;;  %v1932_v23 = vadd.f32 %v1931_v60, %v419_v20  ;;  %v6058_v60 = vld [vmem:[#allocation5 + $0x68] ss:$16 sps:$4 sm:$0xff]  }
 0x18e   :  { %v1933_v34 = vpop.f32.mrf.mxu1  ;;  %3294 = vmatpush1.bf16.msra.mxu1 %v6061_v59  ;;  %3325 = vmatprep.mubr.bf16.mxu1 %v6546_v13  ;;  %v6060_v59 = vld [vmem:[#allocation5 + $0x6c] ss:$16 sps:$4 sm:$0xff]   ;;  %v6094_v20 = vld [vmem:[#allocation5 + $0x1a8] ss:$16 sps:$4 sm:$0xff]  }
 0x18f   :  { %3295 = vmatprep.subr.bf16.mxu1 %v6069_v51  ;;  %v6066_v34 = vld [vmem:[#allocation5 + $0x4c] ss:$16 sps:$4 sm:$0xff]  }
 0x190   :  { %v1934_v46 = vpop.f32.mrf.mxu1 }
 0x192   :  { %3296 = vmatpush1.bf16.msra.mxu1 %v6067_v42  ;;  %v6072_v42 = vld [vmem:[#allocation5 + $0x2c] ss:$16 sps:$4 sm:$0xff]  }
 0x193   :  { %3297 = vmatprep.subr.bf16.mxu1 %v6075_v61  ;;  %v6070_v61 = vld [vmem:[#allocation5 + $0x28] ss:$16 sps:$4 sm:$0xff]  }
 0x196   :  { %3298 = vmatpush1.bf16.msra.mxu1 %v6073_v62  ;;  %v6078_v62 = vld [vmem:[#allocation5 + $0xc] ss:$16 sps:$4 sm:$0xff]  }
 0x197   :  { %3299 = vmatprep.subr.bf16.mxu1 %v6081_v63 }
 0x19a   :  { %3300 = vmatpush1.bf16.msra.mxu1 %v6079_v0  ;;  %v6076_v0 = vld [vmem:[#allocation5 + $0x8] ss:$16 sps:$4 sm:$0xff]  }
 0x19b   :  { %3301 = vmatprep.subr.bf16.mxu1 %v6087_v1  ;;  %v6084_v1 = vld [vmem:[#allocation5 + $0x1ec] ss:$16 sps:$4 sm:$0xff]  }
 0x19e   :  { %3302 = vmatpush1.bf16.msra.mxu1 %v6085_v2 }
 0x19f   :  { %3303 = vmatprep.subr.bf16.mxu1 %v6093_v3 }
 0x1a2   :  { %3304 = vmatpush1.bf16.msra.mxu1 %v6091_v4  ;;  %v6082_v4 = vld [vmem:[#allocation5 + $0x1e8] ss:$16 sps:$4 sm:$0xff]  }
 0x1a3   :  { %3305 = vmatprep.subr.bf16.mxu1 %v6099_v5  ;;  %v6090_v5 = vld [vmem:[#allocation5 + $0x1cc] ss:$16 sps:$4 sm:$0xff]  }
 0x1a6   :  { %3306 = vmatpush1.bf16.msra.mxu1 %v6097_v6 }
 0x1a7   :  { %3307 = vmatprep.subr.bf16.mxu1 %v6105_v8  ;;  %v422_v8 = vsub.s32 4, %v6697_v24  ;;  %v6305_v24 = vld [vmem:[#allocation8 + $0x218] ss:$12 sps:$4 sm:$0xff]  }
 0x1aa   :  { %3308 = vmatpush1.bf16.msra.mxu1 %v6103_v9 }
 0x1ab   :  { %3375 = vmatprep.subr.bf16.mxu1 %v6114_v10  ;;  %v6088_v10 = vld [vmem:[#allocation5 + $0x1c8] ss:$16 sps:$4 sm:$0xff]  }
 0x1c1   :  { %v1970_v33 = vpop.f32.mrf.mxu0 }
 0x1c2   :  { %v1971_v25 = vadd.f32 %v1970_v33, %v1930_v7  ;;  %v6096_v33 = vld [vmem:[#allocation5 + $0x1ac] ss:$16 sps:$4 sm:$0xff]  }
 0x1c3   :  { %v1972_v11 = vpop.f32.mrf.mxu0  ;;  %v6102_v7 = vld [vmem:[#allocation5 + $0x18c] ss:$16 sps:$4 sm:$0xff]  }
 0x1c4   :  { %v1973_v29 = vadd.f32 %v1972_v11, %v1932_v23 }
 0x1c5   :  { %v1974_v14 = vpop.f32.mrf.mxu0 }
 0x1c6   :  { %v423_v14 = vrot.slane %v6705_v35, %v422_v8  ;;  %v6162_v8 = vld [vmem:[#allocation5 + $0x44c] ss:$16 sps:$4 sm:$0xff]  }
 0x1c7   :  { %v1975_v17 = vpop.f32.mrf.mxu0 }
 0x1ca   :  { %v2011_v19 = vpop.f32.mrf.mxu1 }
 0x1cb   :  { %v2012_v30 = vadd.f32 %v2011_v19, %v1971_v25 }
 0x1cc   :  { %v2013_v21 = vpop.f32.mrf.mxu1 }
 0x1cd   :  { %v2014_v38 = vadd.f32 %v2013_v21, %v1973_v29  ;;  %v6100_v29 = vld [vmem:[#allocation5 + $0x188] ss:$16 sps:$4 sm:$0xff]  }
 0x1ce   :  { %v2015_v22 = vpop.f32.mrf.mxu1 }
 0x1d0   :  { %v2016_v26 = vpop.f32.mrf.mxu1 }
 0x1d2   :  { %v2052_v37 = vpop.f32.mrf.mxu1 }
 0x1d3   :  { %v2053_v47 = vadd.f32 %v2052_v37, %v2012_v30  ;;  %v6108_v37 = vld [vmem:[#allocation5 + $0x16c] ss:$16 sps:$4 sm:$0xff]  }
 0x1d4   :  { %v2054_v39 = vpop.f32.mrf.mxu1 }
 0x1d5   :  { %v2055_v15 = vadd.f32 %v2054_v39, %v2014_v38  ;;  %v2221_v40 = vmax.f32 %v2053_v47, 0.0  ;;  %v6106_v39 = vld [vmem:[#allocation5 + $0x168] ss:$16 sps:$4 sm:$0xff]  }
 0x1d6   :  { %v2056_v41 = vpop.f32.mrf.mxu1 }
 0x1d7   :  { %v2222_v43 = vmax.f32 %v2055_v15, 0.0  ;;  %v6738_v49 = vpack.c.bf16 %v2221_v40, %v2221_v40  ;;  %v6111_v15 = vld [vmem:[#allocation5 + $0x14c] ss:$16 sps:$4 sm:$0xff]   ;;  %v6112_v41 = vld [vmem:[#allocation5 + $0x2e8] ss:$16 sps:$4 sm:$0xff]  }
 0x1d8   :  { %v2057_v44 = vpop.f32.mrf.mxu1 }
 0x1d9   :  { %v6736_v45 = vpack.c.bf16 %v2222_v43, %v2222_v43  ;;  %v6109_v44 = vld [vmem:[#allocation5 + $0x148] ss:$16 sps:$4 sm:$0xff]  }
 0x1db   :  { %3284 = vmatprep.mubr.bf16.mxu0 %v6736_v45 }
 0x1dc   :  { %3285 = vmatmul.mubr.bf16.vlgmr.msra.gmra.mxu0 %v6738_v49 }
 0x1dd   :  { %3335 = vmatpush1.bf16.msra.mxu0 %v6046_v48  ;;  %3366 = vmatprep.mubr.bf16.mxu0 %v6720_v32  ;;  %v6064_v32 = vld [vmem:[#allocation5 + $0x48] ss:$16 sps:$4 sm:$0xff]   ;;  %v6120_v48 = vld [vmem:[#allocation5 + $0x2cc] ss:$16 sps:$4 sm:$0xff]  }
 0x1de   :  { %3336 = vmatprep.subr.bf16.mxu0 %v6051_v50  ;;  %v6117_v50 = vld [vmem:[#allocation5 + $0x12c] ss:$16 sps:$4 sm:$0xff]  }
 0x1e1   :  { %3337 = vmatpush1.bf16.msra.mxu0 %v6049_v52  ;;  %v5461_v55 = vpop.f32.mrf.mxu0  ;;  %v6118_v52 = vld [vmem:[#allocation5 + $0x2c8] ss:$16 sps:$4 sm:$0xff]  }
 0x1e2   :  { %3338 = vmatprep.subr.bf16.mxu0 %v6054_v53  ;;  %v6115_v53 = vld [vmem:[#allocation5 + $0x128] ss:$16 sps:$4 sm:$0xff]  }
 0x1e3   :  { %v5462_v57 = vpop.f32.mrf.mxu0 }
 0x1e4   :  { %v5463_v17 = vadd.f32 %v5462_v57, %v5461_v55  ;;  %v6123_v55 = vld [vmem:[#allocation5 + $0x10c] ss:$16 sps:$4 sm:$0xff]   ;;  %v6121_v57 = vld [vmem:[#allocation5 + $0x108] ss:$16 sps:$4 sm:$0xff]  }
 0x1e5   :  { %3339 = vmatpush1.bf16.msra.mxu0 %v6052_v54  ;;  %v5464_v58 = vpop.f32.mrf.mxu0  ;;  %v6126_v54 = vld [vmem:[#allocation5 + $0x2ac] ss:$16 sps:$4 sm:$0xff]  }
 0x1e6   :  { %3340 = vmatprep.subr.bf16.mxu0 %v6057_v56  ;;  %v2094_v22 = vadd.f32 %v5463_v17, %v423_v14  ;;  %v6124_v56 = vld [vmem:[#allocation5 + $0x2a8] ss:$16 sps:$4 sm:$0xff]   ;;  %v6132_v58 = vld [vmem:[#allocation5 + $0x4ec] ss:$16 sps:$4 sm:$0xff]  }
 0x1e7   :  { %v5465_v51 = vpop.f32.mrf.mxu0  ;;  %v6163_v14 = vld [vmem:[#allocation5 + $0x3c8] ss:$16 sps:$4 sm:$0xff]  }
 0x1e8   :  { %v6135_v51 = vld [vmem:[#allocation5 + $0x26c] ss:$16 sps:$4 sm:$0xff]   ;;  %v6166_v17 = vld [vmem:[#allocation5 + $0x428] ss:$16 sps:$4 sm:$0xff]  }
 0x1e9   :  { %3341 = vmatpush1.bf16.msra.mxu0 %v6055_v27  ;;  %v6129_v27 = vld [vmem:[#allocation5 + $0x28c] ss:$16 sps:$4 sm:$0xff]  }
 0x1ea   :  { %3342 = vmatprep.subr.bf16.mxu0 %v6060_v59  ;;  %v6127_v59 = vld [vmem:[#allocation5 + $0x288] ss:$16 sps:$4 sm:$0xff]  }
 0x1ed   :  { %3343 = vmatpush1.bf16.msra.mxu0 %v6058_v60  ;;  %v6138_v60 = vld [vmem:[#allocation5 + $0x4cc] ss:$16 sps:$4 sm:$0xff]  }
 0x1ee   :  { %3344 = vmatprep.subr.bf16.mxu0 %v6066_v34  ;;  %v6133_v34 = vld [vmem:[#allocation5 + $0x268] ss:$16 sps:$4 sm:$0xff]  }
 0x1f1   :  { %3345 = vmatpush1.bf16.msra.mxu0 %v6064_v32  ;;  %v6136_v32 = vld [vmem:[#allocation5 + $0x4c8] ss:$16 sps:$4 sm:$0xff]  }
 0x1f2   :  { %v5483_v46 = vpop.f32.mrf.mxu1  ;;  %3346 = vmatprep.subr.bf16.mxu0 %v6072_v42  ;;  %v6141_v42 = vld [vmem:[#allocation5 + $0x24c] ss:$16 sps:$4 sm:$0xff]  }
 0x1f4   :  { %v5484_v63 = vpop.f32.mrf.mxu1 }
 0x1f5   :  { %3347 = vmatpush1.bf16.msra.mxu0 %v6070_v61  ;;  %v5485_v19 = vadd.f32 %v5484_v63, %v5483_v46  ;;  %v6144_v61 = vld [vmem:[#allocation5 + $0x4ac] ss:$16 sps:$4 sm:$0xff]   ;;  %v6139_v46 = vld [vmem:[#allocation5 + $0x248] ss:$16 sps:$4 sm:$0xff]  }
 0x1f6   :  { %3348 = vmatprep.subr.bf16.mxu0 %v6078_v62  ;;  %v5486_v2 = vpop.f32.mrf.mxu1  ;;  %v6142_v62 = vld [vmem:[#allocation5 + $0x4a8] ss:$16 sps:$4 sm:$0xff]   ;;  %v6147_v63 = vld [vmem:[#allocation5 + $0x22c] ss:$16 sps:$4 sm:$0xff]  }
 0x1f7   :  { %v2134_v25 = vadd.f32 %v5485_v19, %v2094_v22  ;;  %v6153_v2 = vld [vmem:[#allocation5 + $0x20c] ss:$16 sps:$4 sm:$0xff]   ;;  %v6175_v22 = vld [vmem:[#allocation5 + $0x388] ss:$16 sps:$4 sm:$0xff]  }
 0x1f8   :  { %v5487_v3 = vpop.f32.mrf.mxu1  ;;  %v6174_v19 = vld [vmem:[#allocation5 + $0x40c] ss:$16 sps:$4 sm:$0xff]  }
 0x1f9   :  { %3349 = vmatpush1.bf16.msra.mxu0 %v6076_v0  ;;  %v6150_v0 = vld [vmem:[#allocation5 + $0x48c] ss:$16 sps:$4 sm:$0xff]  }
 0x1fa   :  { %3350 = vmatprep.subr.bf16.mxu0 %v6084_v1  ;;  %v2213_v6 = vpop.f32.mrf.mxu1  ;;  %v6148_v1 = vld [vmem:[#allocation5 + $0x488] ss:$16 sps:$4 sm:$0xff]   ;;  %v6156_v3 = vld [vmem:[#allocation5 + $0x46c] ss:$16 sps:$4 sm:$0xff]  }
 0x1fc   :  { %v5583_v9 = vpop.f32.mrf.mxu1 }
 0x1fd   :  { %3351 = vmatpush2.bf16.msra.mxu0 %v6082_v4  ;;  %v6151_v4 = vld [vmem:[#allocation5 + $0x208] ss:$16 sps:$4 sm:$0xff]  }
 0x1fe   :  { %3352 = vmatprep.subr.bf16.mxu0 %v6090_v5  ;;  %v2216_v11 = vpop.f32.mrf.mxu1  ;;  %v6154_v5 = vld [vmem:[#allocation5 + $0x468] ss:$16 sps:$4 sm:$0xff]  }
 0x1ff   :  { %v6157_v9 = vld [vmem:[#allocation5 + $0x3e8] ss:$16 sps:$4 sm:$0xff]   ;;  %v6168_v11 = vld [vmem:[#allocation5 + $0x42c] ss:$16 sps:$4 sm:$0xff]  }
 0x200   :  { %v5584_v18 = vpop.f32.mrf.mxu1 }
 0x201   :  { %3353 = vmatpush2.bf16.msra.mxu0 %v6088_v10  ;;  %v5505_v21 = vpop.f32.mrf.mxu0  ;;  %v6160_v10 = vld [vmem:[#allocation5 + $0x448] ss:$16 sps:$4 sm:$0xff]   ;;  %v6171_v18 = vld [vmem:[#allocation5 + $0x3ac] ss:$16 sps:$4 sm:$0xff]  }
 0x202   :  { %3354 = vmatprep.subr.bf16.mxu0 %v6096_v33  ;;  %v6165_v33 = vld [vmem:[#allocation5 + $0x3cc] ss:$16 sps:$4 sm:$0xff]  }
 0x203   :  { %v5506_v23 = vpop.f32.mrf.mxu0 }
 0x204   :  { %v5507_v26 = vadd.f32 %v5506_v23, %v5505_v21  ;;  %v6172_v21 = vld [vmem:[#allocation5 + $0x408] ss:$16 sps:$4 sm:$0xff]   ;;  %v6180_v23 = vld [vmem:[#allocation5 + $0x36c] ss:$16 sps:$4 sm:$0xff]  }
 0x205   :  { %3355 = vmatpush2.bf16.msra.mxu0 %v6094_v20  ;;  %v5508_v30 = vpop.f32.mrf.mxu0  ;;  %v6169_v20 = vld [vmem:[#allocation5 + $0x3a8] ss:$16 sps:$4 sm:$0xff]  }
 0x206   :  { %3356 = vmatprep.subr.bf16.mxu0 %v6102_v7  ;;  %v2174_v38 = vadd.f32 %v5507_v26, %v2134_v25  ;;  %v6177_v7 = vld [vmem:[#allocation5 + $0x38c] ss:$16 sps:$4 sm:$0xff]   ;;  %v6178_v25 = vld [vmem:[#allocation5 + $0x368] ss:$16 sps:$4 sm:$0xff]  }
 0x207   :  { %v5509_v47 = vpop.f32.mrf.mxu0  ;;  %v6183_v26 = vld [vmem:[#allocation5 + $0x34c] ss:$16 sps:$4 sm:$0xff]  }
 0x208   :  { %v2214_v35 = vadd.f32 %v2213_v6, %v2174_v38  ;;  %v6159_v6 = vld [vmem:[#allocation5 + $0x3ec] ss:$16 sps:$4 sm:$0xff]   ;;  %v6187_v47 = vld [vmem:[#allocation5 + $0x308] ss:$16 sps:$4 sm:$0xff]  }
 0x209   :  { %3357 = vmatpush2.bf16.msra.mxu0 %v6100_v29  ;;  %v6181_v29 = vld [vmem:[#allocation5 + $0x348] ss:$16 sps:$4 sm:$0xff]   ;;  %v6186_v30 = vld [vmem:[#allocation5 + $0x32c] ss:$16 sps:$4 sm:$0xff]  }
 0x20a   :  { %3358 = vmatprep.subr.bf16.mxu0 %v6108_v37  ;;  %v2223_v40 = vmax.f32 %v2214_v35, 0.0  ;;  %v6184_v37 = vld [vmem:[#allocation5 + $0x328] ss:$16 sps:$4 sm:$0xff]   ;;  %v6189_v38 = vld [vmem:[#allocation5 + $0x30c] ss:$16 sps:$4 sm:$0xff]  }
 0x20b   :  { %v6192_v35 = vld [vmem:[#allocation8 + $0xac] ss:$12 sps:$4 sm:$0xff]  }
 0x20c   :  { %v6745_v43 = vpack.c.bf16 %v2223_v40, %v2223_v40 }
 0x20d   :  { %3359 = vmatpush2.bf16.msra.mxu0 %v6106_v39  ;;  %v6190_v39 = vld [vmem:[#allocation8 + $0xa8] ss:$12 sps:$4 sm:$0xff]  }
 0x20e   :  { %3360 = vmatprep.subr.bf16.mxu0 %v6111_v15  ;;  %3326 = vmatmul.mubr.bf16.vlgmr.msra.gmra.mxu1 %v6745_v43  ;;  %v6195_v15 = vld [vmem:[#allocation8 + $0x94] ss:$12 sps:$4 sm:$0xff]  }
 0x20f   :  { %3376 = vmatpush1.bf16.msra.mxu1 %v6112_v41  ;;  %3407 = vmatprep.mubr.bf16.mxu1 %v6736_v45  ;;  %v6130_v45 = vld [vmem:[#allocation5 + $0x4e8] ss:$16 sps:$4 sm:$0xff]  }
 0x210   :  { %3377 = vmatprep.subr.bf16.mxu1 %v6120_v48 }
 0x211   :  { %3361 = vmatpush2.bf16.msra.mxu0 %v6109_v44  ;;  %v6198_v44 = vld [vmem:[#allocation8 + $0x7c] ss:$12 sps:$4 sm:$0xff]  }
 0x212   :  { %3362 = vmatprep.subr.bf16.mxu0 %v6117_v50 }
 0x213   :  { %3378 = vmatpush1.bf16.msra.mxu1 %v6118_v52  ;;  %v6196_v52 = vld [vmem:[#allocation8 + $0x78] ss:$12 sps:$4 sm:$0xff]  }
 0x214   :  { %3379 = vmatprep.subr.bf16.mxu1 %v6126_v54  ;;  %v6199_v54 = vld [vmem:[#allocation8 + $0x60] ss:$12 sps:$4 sm:$0xff]  }
 0x215   :  { %3363 = vmatpush2.bf16.msra.mxu0 %v6115_v53  ;;  %v6201_v53 = vld [vmem:[#allocation8 + $0x64] ss:$12 sps:$4 sm:$0xff]  }
 0x216   :  { %3364 = vmatprep.subr.bf16.mxu0 %v6123_v55  ;;  %v6204_v55 = vld [vmem:[#allocation8 + $0x4c] ss:$12 sps:$4 sm:$0xff]  }
 0x217   :  { %3380 = vmatpush1.bf16.msra.mxu1 %v6124_v56  ;;  %v6239_v56 = vld [vmem:[#allocation8 + $0x228] ss:$12 sps:$4 sm:$0xff]  }
 0x218   :  { %3381 = vmatprep.subr.bf16.mxu1 %v6129_v27  ;;  %v6207_v27 = vld [vmem:[#allocation8 + $0x34] ss:$12 sps:$4 sm:$0xff]  }
 0x219   :  { %3365 = vmatpush2.bf16.msra.mxu0 %v6121_v57  ;;  %v6241_v57 = vld [vmem:[#allocation8 + $0x22c] ss:$12 sps:$4 sm:$0xff]  }
 0x21a   :  { %3416 = vmatprep.subr.bf16.mxu0 %v6132_v58  ;;  %v6246_v58 = vld [vmem:[#allocation8 + $0x214] ss:$12 sps:$4 sm:$0xff]  }
 0x21b   :  { %3382 = vmatpush1.bf16.msra.mxu1 %v6127_v59  ;;  %v6244_v59 = vld [vmem:[#allocation8 + $0x210] ss:$12 sps:$4 sm:$0xff]  }
 0x21c   :  { %3367 = vmatmul.mubr.bf16.vlgmr.msra.gmra.mxu0 %v6722_v28  ;;  %3383 = vmatprep.subr.bf16.mxu1 %v6135_v51  ;;  %v6145_v28 = vld [vmem:[#allocation5 + $0x228] ss:$16 sps:$4 sm:$0xff]   ;;  %v6210_v51 = vld [vmem:[#allocation8 + $0x1c] ss:$12 sps:$4 sm:$0xff]  }
 0x21d   :  { %3417 = vmatpush1.bf16.msra.mxu0 %v6130_v45  ;;  %3448 = vmatprep.mubr.bf16.mxu0 %v6546_v13  ;;  %v6205_v45 = vld [vmem:[#allocation8 + $0x30] ss:$12 sps:$4 sm:$0xff]  }
 0x21e   :  { %3418 = vmatprep.subr.bf16.mxu0 %v6138_v60  ;;  %v6251_v60 = vld [vmem:[#allocation8 + $0x1fc] ss:$12 sps:$4 sm:$0xff]  }
 0x21f   :  { %3384 = vmatpush1.bf16.msra.mxu1 %v6133_v34  ;;  %v6249_v34 = vld [vmem:[#allocation8 + $0x1f8] ss:$12 sps:$4 sm:$0xff]  }
 0x220   :  { %3385 = vmatprep.subr.bf16.mxu1 %v6141_v42  ;;  %v6208_v42 = vld [vmem:[#allocation8 + $0x18] ss:$12 sps:$4 sm:$0xff]  }
 0x221   :  { %3419 = vmatpush1.bf16.msra.mxu0 %v6136_v32  ;;  %v6256_v32 = vld [vmem:[#allocation8 + $0x1e4] ss:$12 sps:$4 sm:$0xff]  }
 0x222   :  { %3420 = vmatprep.subr.bf16.mxu0 %v6144_v61  ;;  %v6254_v61 = vld [vmem:[#allocation8 + $0x1e0] ss:$12 sps:$4 sm:$0xff]  }
 0x223   :  { %3386 = vmatpush1.bf16.msra.mxu1 %v6139_v46  ;;  %v6213_v46 = vld [vmem:[#allocation8 + $0x4] ss:$12 sps:$4 sm:$0xff]  }
 0x224   :  { %3387 = vmatprep.subr.bf16.mxu1 %v6147_v63  ;;  %v6211_v63 = vld [vmem:[#allocation8] ss:$12 sps:$4 sm:$0xff]  }
 0x225   :  { %3421 = vmatpush1.bf16.msra.mxu0 %v6142_v62  ;;  %v6261_v62 = vld [vmem:[#allocation8 + $0x1cc] ss:$12 sps:$4 sm:$0xff]  }
 0x226   :  { %3422 = vmatprep.subr.bf16.mxu0 %v6150_v0  ;;  %v6259_v0 = vld [vmem:[#allocation8 + $0x1c8] ss:$12 sps:$4 sm:$0xff]  }
 0x227   :  { %3388 = vmatpush1.bf16.msra.mxu1 %v6145_v28  ;;  %v6216_v28 = vld [vmem:[#allocation8 + $0x16c] ss:$12 sps:$4 sm:$0xff]  }
 0x228   :  { %3389 = vmatprep.subr.bf16.mxu1 %v6153_v2  ;;  %v6214_v2 = vld [vmem:[#allocation8 + $0x168] ss:$12 sps:$4 sm:$0xff]  }
 0x229   :  { %3423 = vmatpush1.bf16.msra.mxu0 %v6148_v1  ;;  %v6266_v1 = vld [vmem:[#allocation8 + $0x1b4] ss:$12 sps:$4 sm:$0xff]  }
 0x22a   :  { %3424 = vmatprep.subr.bf16.mxu0 %v6156_v3  ;;  %v6264_v3 = vld [vmem:[#allocation8 + $0x1b0] ss:$12 sps:$4 sm:$0xff]  }
 0x22b   :  { %3390 = vmatpush1.bf16.msra.mxu1 %v6151_v4  ;;  %v6219_v4 = vld [vmem:[#allocation8 + $0x154] ss:$12 sps:$4 sm:$0xff]  }
 0x22c   :  { %3391 = vmatprep.subr.bf16.mxu1 %v6159_v6  ;;  %v6217_v6 = vld [vmem:[#allocation8 + $0x150] ss:$12 sps:$4 sm:$0xff]  }
 0x22d   :  { %3425 = vmatpush1.bf16.msra.mxu0 %v6154_v5  ;;  %v6271_v5 = vld [vmem:[#allocation8 + $0x19c] ss:$12 sps:$4 sm:$0xff]  }
 0x22e   :  { %3426 = vmatprep.subr.bf16.mxu0 %v6162_v8  ;;  %v6269_v8 = vld [vmem:[#allocation8 + $0x198] ss:$12 sps:$4 sm:$0xff]  }
 0x22f   :  { %3392 = vmatpush2.bf16.msra.mxu1 %v6157_v9  ;;  %v6222_v9 = vld [vmem:[#allocation8 + $0x13c] ss:$12 sps:$4 sm:$0xff]  }
 0x230   :  { %3393 = vmatprep.subr.bf16.mxu1 %v6165_v33  ;;  %v6220_v33 = vld [vmem:[#allocation8 + $0x138] ss:$12 sps:$4 sm:$0xff]  }
 0x231   :  { %3427 = vmatpush1.bf16.msra.mxu0 %v6160_v10  ;;  %v6276_v10 = vld [vmem:[#allocation8 + $0x184] ss:$12 sps:$4 sm:$0xff]  }
 0x232   :  { %3428 = vmatprep.subr.bf16.mxu0 %v6168_v11  ;;  %v6274_v11 = vld [vmem:[#allocation8 + $0x180] ss:$12 sps:$4 sm:$0xff]  }
 0x233   :  { %3394 = vmatpush2.bf16.msra.mxu1 %v6163_v14  ;;  %v6225_v14 = vld [vmem:[#allocation8 + $0x124] ss:$12 sps:$4 sm:$0xff]  }
 0x234   :  { %3395 = vmatprep.subr.bf16.mxu1 %v6171_v18  ;;  %v6228_v18 = vld [vmem:[#allocation8 + $0x10c] ss:$12 sps:$4 sm:$0xff]  }
 0x235   :  { %3429 = vmatpush1.bf16.msra.mxu0 %v6166_v17  ;;  %v6223_v17 = vld [vmem:[#allocation8 + $0x120] ss:$12 sps:$4 sm:$0xff]  }
 0x236   :  { %3430 = vmatprep.subr.bf16.mxu0 %v6174_v19  ;;  %v6278_v19 = vld [vmem:[#allocation8 + $0x2e8] ss:$12 sps:$4 sm:$0xff]  }
 0x237   :  { %3396 = vmatpush2.bf16.msra.mxu1 %v6169_v20  ;;  %v6280_v20 = vld [vmem:[#allocation8 + $0x2ec] ss:$12 sps:$4 sm:$0xff]  }
 0x238   :  { %3397 = vmatprep.subr.bf16.mxu1 %v6177_v7  ;;  %v6231_v7 = vld [vmem:[#allocation8 + $0xf4] ss:$12 sps:$4 sm:$0xff]  }
 0x239   :  { %3431 = vmatpush1.bf16.msra.mxu0 %v6172_v21  ;;  %v6226_v21 = vld [vmem:[#allocation8 + $0x108] ss:$12 sps:$4 sm:$0xff]  }
 0x23a   :  { %4163 = vmatprep.subr.bf16.mxu0 %v6241_v57 }
 0x23b   :  { %3398 = vmatpush2.bf16.msra.mxu1 %v6175_v22  ;;  %v6283_v22 = vld [vmem:[#allocation8 + $0x2d4] ss:$12 sps:$4 sm:$0xff]  }
 0x23c   :  { %3449 = vmatmul.mubr.bf16.vlgmr.msra.gmra.mxu0 %v6745_v43  ;;  %3399 = vmatprep.subr.bf16.mxu1 %v6180_v23  ;;  %v6193_v43 = vld [vmem:[#allocation8 + $0x90] ss:$12 sps:$4 sm:$0xff]  }
 0x23d   :  { %4164 = vmatpush1.bf16.msra.mxu0 %v6239_v56  ;;  %v6281_v23 = vld [vmem:[#allocation8 + $0x2d0] ss:$12 sps:$4 sm:$0xff]  }
 0x23e   :  { %4165 = vmatprep.subr.bf16.mxu0 %v6246_v58  ;;  %v6302_v56 = vld [vmem:[#allocation8 + $0x2f0] ss:$12 sps:$4 sm:$0xff]  }
 0x23f   :  { %3400 = vmatpush2.bf16.msra.mxu1 %v6178_v25  ;;  %v6229_v25 = vld [vmem:[#allocation8 + $0xf0] ss:$12 sps:$4 sm:$0xff]  }
 0x240   :  { %3401 = vmatprep.subr.bf16.mxu1 %v6183_v26  ;;  %v6234_v26 = vld [vmem:[#allocation8 + $0xdc] ss:$12 sps:$4 sm:$0xff]  }
 0x241   :  { %4166 = vmatpush1.bf16.msra.mxu0 %v6244_v59  ;;  %v2389_v59 = vld [vmem:[#allocation7] sm:$0xf] }
 0x242   :  { %4167 = vmatprep.subr.bf16.mxu0 %v6251_v60 }
 0x243   :  { %3402 = vmatpush2.bf16.msra.mxu1 %v6181_v29  ;;  %v6286_v29 = vld [vmem:[#allocation8 + $0x2bc] ss:$12 sps:$4 sm:$0xff]  }
 0x244   :  { %3403 = vmatprep.subr.bf16.mxu1 %v6186_v30  ;;  %v6284_v30 = vld [vmem:[#allocation8 + $0x2b8] ss:$12 sps:$4 sm:$0xff]  }
 0x245   :  { %4168 = vmatpush1.bf16.msra.mxu0 %v6249_v34 }
 0x246   :  { %4169 = vmatprep.subr.bf16.mxu0 %v6256_v32 }
 0x247   :  { %3404 = vmatpush2.bf16.msra.mxu1 %v6184_v37  ;;  %v6289_v37 = vld [vmem:[#allocation8 + $0x2a4] ss:$12 sps:$4 sm:$0xff]  }
 0x248   :  { %3405 = vmatprep.subr.bf16.mxu1 %v6189_v38  ;;  %v6232_v38 = vld [vmem:[#allocation8 + $0xd8] ss:$12 sps:$4 sm:$0xff]  }
 0x249   :  { %4170 = vmatpush1.bf16.msra.mxu0 %v6254_v61 }
 0x24a   :  { %4171 = vmatprep.subr.bf16.mxu0 %v6261_v62 }
 0x24b   :  { %3406 = vmatpush2.bf16.msra.mxu1 %v6187_v47  ;;  %v6287_v47 = vld [vmem:[#allocation8 + $0x2a0] ss:$12 sps:$4 sm:$0xff]  }
 0x24c   :  { %4122 = vmatprep.subr.bf16.mxu1 %v6192_v35  ;;  %v6237_v35 = vld [vmem:[#allocation8 + $0xc4] ss:$12 sps:$4 sm:$0xff]  }
 0x24d   :  { %v6752_v40 = vpop.f32.mrf.mxu1  ;;  %4172 = vmatpush1.bf16.msra.mxu0 %v6259_v0 }
 0x24e   :  { %3408 = vmatmul.mubr.bf16.vlgmr.msra.gmra.mxu1 %v6738_v49  ;;  %v6202_v49 = vld [vmem:[#allocation8 + $0x48] ss:$12 sps:$4 sm:$0xff]   ;;  %4173 = vmatprep.subr.bf16.mxu0 %v6266_v1 }
 0x24f   :  { %v6755_v41 = vpop.f32.mrf.mxu1  ;;  %4123 = vmatpush1.bf16.msra.mxu1 %v6190_v39  ;;  %v6292_v39 = vld [vmem:[#allocation8 + $0x28c] ss:$12 sps:$4 sm:$0xff]  }
 0x250   :  { %4124 = vmatprep.subr.bf16.mxu1 %v6195_v15  ;;  %v6235_v15 = vld [vmem:[#allocation8 + $0xc0] ss:$12 sps:$4 sm:$0xff]  }
 0x251   :  { %v3249_v48 = vpop.f32.mrf.mxu1  ;;  %4174 = vmatpush1.bf16.msra.mxu0 %v6264_v3 }
 0x252   :  { %4175 = vmatprep.subr.bf16.mxu0 %v6271_v5  ;;  %v6295_v48 = vld [vmem:[#allocation8 + $0x274] ss:$12 sps:$4 sm:$0xff]  }
 0x253   :  { %v3250_v50 = vpop.f32.mrf.mxu1  ;;  %4125 = vmatpush1.bf16.msra.mxu1 %v6193_v43  ;;  %v6290_v43 = vld [vmem:[#allocation8 + $0x288] ss:$12 sps:$4 sm:$0xff]  }
 0x254   :  { %4126 = vmatprep.subr.bf16.mxu1 %v6198_v44  ;;  %v6238_v44 = vld [vmem:[#allocation8 + $0x170] ss:$12 sps:$4 sm:$0xff]  }
 0x255   :  { %4176 = vmatpush1.bf16.msra.mxu0 %v6269_v8  ;;  %v6293_v50 = vld [vmem:[#allocation8 + $0x270] ss:$12 sps:$4 sm:$0xff]  }
 0x256   :  { %4177 = vmatprep.subr.bf16.mxu0 %v6276_v10  ;;  %v6252_v10 = vld [vmem:[#allocation8 + $0x80] ss:$12 sps:$4 sm:$0xff]  }
 0x257   :  { %4127 = vmatpush1.bf16.msra.mxu1 %v6196_v52  ;;  %v6298_v52 = vld [vmem:[#allocation8 + $0x25c] ss:$12 sps:$4 sm:$0xff]  }
 0x258   :  { %4128 = vmatprep.subr.bf16.mxu1 %v6201_v53  ;;  %v6296_v53 = vld [vmem:[#allocation8 + $0x258] ss:$12 sps:$4 sm:$0xff]  }
 0x259   :  { %4178 = vmatpush1.bf16.msra.mxu0 %v6274_v11 }
 0x25a   :  { %4179 = vmatprep.subr.bf16.mxu0 %v6280_v20  ;;  %v6263_v20 = vld [vmem:[#allocation8 + $0xf8] ss:$12 sps:$4 sm:$0xff]  }
 0x25b   :  { %4129 = vmatpush1.bf16.msra.mxu1 %v6199_v54  ;;  %v6301_v54 = vld [vmem:[#allocation8 + $0x244] ss:$12 sps:$4 sm:$0xff]  }
 0x25c   :  { %4130 = vmatprep.subr.bf16.mxu1 %v6204_v55  ;;  %v6299_v55 = vld [vmem:[#allocation8 + $0x240] ss:$12 sps:$4 sm:$0xff]  }
 0x25d   :  { %4180 = vmatpush2.bf16.msra.mxu0 %v6278_v19  ;;  %v6262_v19 = vld [vmem:[#allocation8 + $0x50] ss:$12 sps:$4 sm:$0xff]  }
 0x25e   :  { %4181 = vmatprep.subr.bf16.mxu0 %v6283_v22  ;;  %v6272_v22 = vld [vmem:[#allocation8 + $0x20] ss:$12 sps:$4 sm:$0xff]  }
 0x25f   :  { %4131 = vmatpush1.bf16.msra.mxu1 %v6202_v49 }
 0x260   :  { %4132 = vmatprep.subr.bf16.mxu1 %v6207_v27 }
 0x261   :  { %4182 = vmatpush2.bf16.msra.mxu0 %v6281_v23  ;;  %v6273_v23 = vld [vmem:[#allocation8 + $0xc8] ss:$12 sps:$4 sm:$0xff]  }
 0x262   :  { %4183 = vmatprep.subr.bf16.mxu0 %v6286_v29 }
 0x263   :  { %4133 = vmatpush1.bf16.msra.mxu1 %v6205_v45  ;;  %v2394_v45 = vrot.slane %v2389_v59, %v6700_v31 }
 0x264   :  { %4134 = vmatprep.subr.bf16.mxu1 %v6210_v51  ;;  %v2398_v51 = vrot.slane %v2389_v59, %v6708_v36 }
 0x265   :  { %4184 = vmatpush2.bf16.msra.mxu0 %v6284_v30  ;;  %v3246_v60 = vadd.f32 %v6752_v40, %v2394_v45  ;;  %v6247_v40 = vld [vmem:[#allocation8 + $0x98] ss:$12 sps:$4 sm:$0xff]   ;;  %v6320_v45 = vld [vmem:[%s6978_s7 + $0x74] ss:$8 sps:$4 sm:$0xff]  }
 0x266   :  { %4185 = vmatprep.subr.bf16.mxu0 %v6289_v37  ;;  %v3248_v34 = vadd.f32 %v6755_v41, %v2398_v51  ;;  %v6248_v41 = vld [vmem:[#allocation8 + $0x140] ss:$12 sps:$4 sm:$0xff]  }
 0x267   :  { %4135 = vmatpush1.bf16.msra.mxu1 %v6208_v42  ;;  %v6307_v51 = vld [vmem:[#allocation8 + $0x200] ss:$12 sps:$4 sm:$0xff]  }
 0x268   :  { %4136 = vmatprep.subr.bf16.mxu1 %v6213_v46 }
 0x269   :  { %4186 = vmatpush2.bf16.msra.mxu0 %v6287_v47  ;;  %v2406_v47 = vrot.slane %v2389_v59, %v418_v16  ;;  %v6306_v16 = vld [vmem:[#allocation8 + $0x2c0] ss:$12 sps:$4 sm:$0xff]  }
 0x26a   :  { %4187 = vmatprep.subr.bf16.mxu0 %v6292_v39 }
 0x26b   :  { %4137 = vmatpush1.bf16.msra.mxu1 %v6211_v63 }
 0x26c   :  { %4138 = vmatprep.subr.bf16.mxu1 %v6216_v28 }
 0x26d   :  { %4188 = vmatpush2.bf16.msra.mxu0 %v6290_v43 }
 0x26e   :  { %4189 = vmatprep.subr.bf16.mxu0 %v6295_v48 }
 0x26f   :  { %4139 = vmatpush2.bf16.msra.mxu1 %v6214_v2 }
 0x270   :  { %4140 = vmatprep.subr.bf16.mxu1 %v6219_v4  ;;  %v6242_v4 = vld [vmem:[#allocation8 + $0xb0] ss:$12 sps:$4 sm:$0xff]  }
 0x271   :  { %4190 = vmatpush2.bf16.msra.mxu0 %v6293_v50 }
 0x272   :  { %4191 = vmatprep.subr.bf16.mxu0 %v6298_v52 }
 0x273   :  { %4141 = vmatpush2.bf16.msra.mxu1 %v6217_v6  ;;  %v6243_v6 = vld [vmem:[#allocation8 + $0x158] ss:$12 sps:$4 sm:$0xff]  }
 0x274   :  { %4142 = vmatprep.subr.bf16.mxu1 %v6222_v9 }
 0x275   :  { %4192 = vmatpush2.bf16.msra.mxu0 %v6296_v53 }
 0x276   :  { %4193 = vmatprep.subr.bf16.mxu0 %v6301_v54 }
 0x277   :  { %4143 = vmatpush2.bf16.msra.mxu1 %v6220_v33  ;;  %v6253_v33 = vld [vmem:[#allocation8 + $0x128] ss:$12 sps:$4 sm:$0xff]  }
 0x278   :  { %4144 = vmatprep.subr.bf16.mxu1 %v6225_v14 }
 0x279   :  { %4194 = vmatpush2.bf16.msra.mxu0 %v6299_v55 }
 0x27a   :  { %5535 = vmatprep.subr.bf16.mxu0 %v6302_v56 }
 0x27b   :  { %4145 = vmatpush2.bf16.msra.mxu1 %v6223_v17  ;;  %v6257_v17 = vld [vmem:[#allocation8 + $0x68] ss:$12 sps:$4 sm:$0xff]  }
 0x27c   :  { %4146 = vmatprep.subr.bf16.mxu1 %v6228_v18  ;;  %v6258_v18 = vld [vmem:[#allocation8 + $0x110] ss:$12 sps:$4 sm:$0xff]  }
 0x27f   :  { %4147 = vmatpush2.bf16.msra.mxu1 %v6226_v21  ;;  %v6267_v21 = vld [vmem:[#allocation8 + $0x38] ss:$12 sps:$4 sm:$0xff]  }
 0x280   :  { %4148 = vmatprep.subr.bf16.mxu1 %v6231_v7  ;;  %v6268_v7 = vld [vmem:[#allocation8 + $0xe0] ss:$12 sps:$4 sm:$0xff]  }
 0x283   :  { %4149 = vmatpush2.bf16.msra.mxu1 %v6229_v25  ;;  %v6277_v25 = vld [vmem:[#allocation8 + $0x8] ss:$12 sps:$4 sm:$0xff]  }
 0x284   :  { %4150 = vmatprep.subr.bf16.mxu1 %v6234_v26 }
 0x287   :  { %4151 = vmatpush2.bf16.msra.mxu1 %v6232_v38  ;;  %v2402_v38 = vrot.slane %v2389_v59, %v6728_v12  ;;  %v6318_v59 = vld [vmem:[%s6978_s7 + $0x70] ss:$8 sps:$4 sm:$0xff]  }
 0x288   :  { %4152 = vmatprep.subr.bf16.mxu1 %v6237_v35 }
 0x28b   :  { %4153 = vmatpush2.bf16.msra.mxu1 %v6235_v15 }
 0x28c   :  { %5513 = vmatprep.subr.bf16.mxu1 %v6238_v44 }
 0x29c   :  { %v3286_v57 = vpop.f32.mrf.mxu0 }
 0x29d   :  { %v3287_v32 = vadd.f32 %v3286_v57, %v3246_v60  ;;  %v6323_v60 = vld [vmem:[%s6978_s7 + $0x64] ss:$8 sps:$4 sm:$0xff]  }
 0x29e   :  { %v3288_v49 = vpop.f32.mrf.mxu0 }
 0x29f   :  { %v3289_v61 = vadd.f32 %v3288_v49, %v3248_v34  ;;  %v6303_v49 = vld [vmem:[#allocation8 + $0x230] ss:$12 sps:$4 sm:$0xff]   ;;  %v6308_v34 = vld [vmem:[#allocation8 + $0x2a8] ss:$12 sps:$4 sm:$0xff]  }
 0x2a0   :  { %v3290_v27 = vpop.f32.mrf.mxu0 }
 0x2a2   :  { %v3291_v58 = vpop.f32.mrf.mxu0 }
 0x2a3   :  { %v6304_v58 = vld [vmem:[#allocation8 + $0x2d8] ss:$12 sps:$4 sm:$0xff]  }
 0x2ce   :  { %v3327_v42 = vpop.f32.mrf.mxu1 }
 0x2cf   :  { %v3328_v46 = vadd.f32 %v3327_v42, %v3287_v32  ;;  %v6321_v32 = vld [vmem:[%s6978_s7 + $0x60] ss:$8 sps:$4 sm:$0xff]   ;;  %v6326_v42 = vld [vmem:[%s6978_s7 + $0x54] ss:$8 sps:$4 sm:$0xff]  }
 0x2d0   :  { %v3329_v62 = vpop.f32.mrf.mxu1 }
 0x2d1   :  { %v3330_v63 = vadd.f32 %v3329_v62, %v3289_v61  ;;  %v3457_v0 = vmax.f32 %v3328_v46, 0.0  ;;  %v6309_v61 = vld [vmem:[#allocation8 + $0x1e8] ss:$12 sps:$4 sm:$0xff]   ;;  %v6310_v46 = vld [vmem:[#allocation8 + $0x290] ss:$12 sps:$4 sm:$0xff]  }
 0x2d2   :  { %v3331_v28 = vpop.f32.mrf.mxu1  ;;  %v6324_v62 = vld [vmem:[%s6978_s7 + $0x50] ss:$8 sps:$4 sm:$0xff]  }
 0x2d3   :  { %v3458_v1 = vmax.f32 %v3330_v63, 0.0  ;;  %v3461_v5 = vpack.c.bf16 %v3457_v0, %v3457_v0  ;;  %v6329_v63 = vld [vmem:[%s6978_s7 + $0x44] ss:$8 sps:$4 sm:$0xff]   ;;  %v6311_v0 = vld [vmem:[#allocation8 + $0x1d0] ss:$12 sps:$4 sm:$0xff]  }
 0x2d4   :  { %v3332_v2 = vpop.f32.mrf.mxu1  ;;  %v6312_v28 = vld [vmem:[#allocation8 + $0x278] ss:$12 sps:$4 sm:$0xff]  }
 0x2d5   :  { %v3462_v3 = vpack.c.bf16 %v3458_v1, %v3458_v1  ;;  %v6327_v1 = vld [vmem:[%s6978_s7 + $0x40] ss:$8 sps:$4 sm:$0xff]   ;;  %v6332_v2 = vld [vmem:[%s6978_s7 + $0x34] ss:$8 sps:$4 sm:$0xff]  }
 0x2d7   :  { %4154 = vmatprep.mubr.bf16.mxu1 %v3462_v3 }
 0x2d8   :  { %4155 = vmatmul.mubr.bf16.vlgmr.msra.gmra.mxu1 %v3461_v5 }
 0x2d9   :  { %5514 = vmatpush3.bf16.msra.mxu1 %v6242_v4  ;;  %4236 = vmatprep.mubr.bf16.mxu1 %v3462_v3  ;;  %v6313_v3 = vld [vmem:[#allocation8 + $0x1b8] ss:$12 sps:$4 sm:$0xff]   ;;  %v6314_v4 = vld [vmem:[#allocation8 + $0x260] ss:$12 sps:$4 sm:$0xff]  }
 0x2da   :  { %5515 = vmatprep.subr.bf16.mxu1 %v6243_v6  ;;  %v6315_v6 = vld [vmem:[#allocation8 + $0x1a0] ss:$12 sps:$4 sm:$0xff]  }
 0x2dc   :  { %v3368_v8 = vpop.f32.mrf.mxu0 }
 0x2dd   :  { %5516 = vmatpush3.bf16.msra.mxu1 %v6247_v40  ;;  %v3369_v35 = vadd.f32 %v3368_v8, %v2402_v38  ;;  %v6316_v40 = vld [vmem:[#allocation8 + $0x248] ss:$12 sps:$4 sm:$0xff]   ;;  %v6335_v8 = vld [vmem:[%s6978_s7 + $0x24] ss:$8 sps:$4 sm:$0xff]  }
 0x2de   :  { %v3370_v9 = vpop.f32.mrf.mxu0  ;;  %5517 = vmatprep.subr.bf16.mxu1 %v6248_v41  ;;  %v6317_v41 = vld [vmem:[#allocation8 + $0x188] ss:$12 sps:$4 sm:$0xff]   ;;  %v6365_v38 = vld [vmem:[%s6978_s7 + $0x84] ss:$8 sps:$4 sm:$0xff]  }
 0x2df   :  { %v3371_v15 = vadd.f32 %v3370_v9, %v2406_v47  ;;  %v6333_v9 = vld [vmem:[%s6978_s7 + $0x20] ss:$8 sps:$4 sm:$0xff]  }
 0x2e0   :  { %v3372_v11 = vpop.f32.mrf.mxu0  ;;  %v6363_v47 = vld [vmem:[%s6978_s7 + $0x80] ss:$8 sps:$4 sm:$0xff]  }
 0x2e1   :  { %5518 = vmatpush3.bf16.msra.mxu1 %v6252_v10  ;;  %v6338_v10 = vld [vmem:[%s6978_s7 + $0x14] ss:$8 sps:$4 sm:$0xff]   ;;  %v6339_v11 = vld [vmem:[%s6978_s7] ss:$8 sps:$4 sm:$0xff]  }
 0x2e2   :  { %v3373_v14 = vpop.f32.mrf.mxu0  ;;  %5519 = vmatprep.subr.bf16.mxu1 %v6253_v33  ;;  %v6336_v33 = vld [vmem:[%s6978_s7 + $0x10] ss:$8 sps:$4 sm:$0xff]  }
 0x2e3   :  { %v6341_v14 = vld [vmem:[%s6978_s7 + $0x4] ss:$8 sps:$4 sm:$0xff]  }
 0x2e5   :  { %5520 = vmatpush3.bf16.msra.mxu1 %v6257_v17  ;;  %v6344_v17 = vld [vmem:[%s6978_s7 + $0xf4] ss:$8 sps:$4 sm:$0xff]  }
 0x2e6   :  { %5521 = vmatprep.subr.bf16.mxu1 %v6258_v18  ;;  %v6347_v18 = vld [vmem:[%s6978_s7 + $0xe4] ss:$8 sps:$4 sm:$0xff]  }
 0x2e9   :  { %5522 = vmatpush3.bf16.msra.mxu1 %v6262_v19  ;;  %v6345_v19 = vld [vmem:[%s6978_s7 + $0xe0] ss:$8 sps:$4 sm:$0xff]  }
 0x2ea   :  { %5523 = vmatprep.subr.bf16.mxu1 %v6263_v20  ;;  %v6350_v20 = vld [vmem:[%s6978_s7 + $0xd4] ss:$8 sps:$4 sm:$0xff]  }
 0x2ed   :  { %5524 = vmatpush3.bf16.msra.mxu1 %v6267_v21  ;;  %v6348_v21 = vld [vmem:[%s6978_s7 + $0xd0] ss:$8 sps:$4 sm:$0xff]  }
 0x2ee   :  { %5525 = vmatprep.subr.bf16.mxu1 %v6268_v7  ;;  %v6353_v7 = vld [vmem:[%s6978_s7 + $0xc4] ss:$8 sps:$4 sm:$0xff]  }
 0x2f1   :  { %5526 = vmatpush3.bf16.msra.mxu1 %v6272_v22  ;;  %v6351_v22 = vld [vmem:[%s6978_s7 + $0xc0] ss:$8 sps:$4 sm:$0xff]  }
 0x2f2   :  { %5527 = vmatprep.subr.bf16.mxu1 %v6273_v23  ;;  %v6356_v23 = vld [vmem:[%s6978_s7 + $0xb4] ss:$8 sps:$4 sm:$0xff]  }
 0x2f5   :  { %5528 = vmatpush3.bf16.msra.mxu1 %v6277_v25  ;;  %v6354_v25 = vld [vmem:[%s6978_s7 + $0xb0] ss:$8 sps:$4 sm:$0xff]  }
 0x2f6   :  { %4590 = vmatprep.subr.bf16.mxu1 %v6320_v45 }
 0x2f8   :  { %4237 = vmatmul.mubr.bf16.vlgmr.msra.gmra.mxu1 %v3461_v5  ;;  %v6330_v5 = vld [vmem:[%s6978_s7 + $0x30] ss:$8 sps:$4 sm:$0xff]  }
 0x2f9   :  { %4591 = vmatpush1.bf16.msra.mxu1 %v6318_v59 }
 0x2fa   :  { %4592 = vmatprep.subr.bf16.mxu1 %v6323_v60 }
 0x2fc   :  { %v3450_v26 = vpop.f32.mrf.mxu0 }
 0x2fd   :  { %4593 = vmatpush1.bf16.msra.mxu1 %v6321_v32 }
 0x2fe   :  { %v3452_v29 = vpop.f32.mrf.mxu0  ;;  %4594 = vmatprep.subr.bf16.mxu1 %v6326_v42 }
 0x300   :  { %v3454_v30 = vpop.f32.mrf.mxu0 }
 0x301   :  { %4595 = vmatpush1.bf16.msra.mxu1 %v6324_v62  ;;  %v6362_v30 = vld [vmem:[%s6978_s7 + $0x94] ss:$8 sps:$4 sm:$0xff]  }
 0x302   :  { %v3455_v37 = vpop.f32.mrf.mxu0  ;;  %4596 = vmatprep.subr.bf16.mxu1 %v6329_v63 }
 0x303   :  { %v6360_v37 = vld [vmem:[%s6978_s7 + $0x90] ss:$8 sps:$4 sm:$0xff]  }
 0x305   :  { %4597 = vmatpush1.bf16.msra.mxu1 %v6327_v1 }
 0x306   :  { %4598 = vmatprep.subr.bf16.mxu1 %v6332_v2 }
 0x309   :  { %4599 = vmatpush1.bf16.msra.mxu1 %v6330_v5 }
 0x30a   :  { %4600 = vmatprep.subr.bf16.mxu1 %v6335_v8 }
 0x30d   :  { %4601 = vmatpush1.bf16.msra.mxu1 %v6333_v9 }
 0x30e   :  { %v3409_v39 = vpop.f32.mrf.mxu1  ;;  %4602 = vmatprep.subr.bf16.mxu1 %v6338_v10 }
 0x30f   :  { %v3410_v43 = vadd.f32 %v3409_v39, %v3369_v35  ;;  %v6368_v35 = vld [vmem:[%s6978_s7 + $0x174] ss:$8 sps:$4 sm:$0xff]   ;;  %v6366_v39 = vld [vmem:[%s6978_s7 + $0x170] ss:$8 sps:$4 sm:$0xff]  }
 0x310   :  { %v3411_v44 = vpop.f32.mrf.mxu1 }
 0x311   :  { %v3451_v48 = vadd.f32 %v3450_v26, %v3410_v43  ;;  %v3412_v50 = vadd.f32 %v3411_v44, %v3371_v15  ;;  %4603 = vmatpush1.bf16.msra.mxu1 %v6336_v33  ;;  %v6359_v26 = vld [vmem:[%s6978_s7 + $0xa4] ss:$8 sps:$4 sm:$0xff]   ;;  %v6369_v43 = vld [vmem:[%s6978_s7 + $0x160] ss:$8 sps:$4 sm:$0xff]   ;;  %v6374_v44 = vld [vmem:[%s6978_s7 + $0x154] ss:$8 sps:$4 sm:$0xff]  }
 0x312   :  { %v3413_v52 = vpop.f32.mrf.mxu1  ;;  %4604 = vmatprep.subr.bf16.mxu1 %v6341_v14  ;;  %v6371_v15 = vld [vmem:[%s6978_s7 + $0x164] ss:$8 sps:$4 sm:$0xff]  }
 0x313   :  { %v3453_v53 = vadd.f32 %v3452_v29, %v3412_v50  ;;  %v3459_v54 = vmax.f32 %v3451_v48, 0.0  ;;  %v6357_v29 = vld [vmem:[%s6978_s7 + $0xa0] ss:$8 sps:$4 sm:$0xff]   ;;  %v6372_v48 = vld [vmem:[%s6978_s7 + $0x150] ss:$8 sps:$4 sm:$0xff]  }
 0x314   :  { %v3414_v55 = vpop.f32.mrf.mxu1  ;;  %v6377_v50 = vld [vmem:[%s6978_s7 + $0x144] ss:$8 sps:$4 sm:$0xff]   ;;  %v6375_v52 = vld [vmem:[%s6978_s7 + $0x140] ss:$8 sps:$4 sm:$0xff]  }
 0x315   :  { %v3460_v56 = vmax.f32 %v3453_v53, 0.0  ;;  %v3463_v27 = vpack.c.bf16 %v3459_v54, %v3459_v54  ;;  %4605 = vmatpush1.bf16.msra.mxu1 %v6339_v11  ;;  %v6380_v53 = vld [vmem:[%s6978_s7 + $0x134] ss:$8 sps:$4 sm:$0xff]   ;;  %v6378_v54 = vld [vmem:[%s6978_s7 + $0x130] ss:$8 sps:$4 sm:$0xff]  }
 0x316   :  { %4606 = vmatprep.subr.bf16.mxu1 %v6344_v17  ;;  %v6383_v55 = vld [vmem:[%s6978_s7 + $0x124] ss:$8 sps:$4 sm:$0xff]  }
 0x317   :  { %v3464_v57 = vpack.c.bf16 %v3460_v56, %v3460_v56  ;;  %v6381_v56 = vld [vmem:[%s6978_s7 + $0x120] ss:$8 sps:$4 sm:$0xff]  }
 0x319   :  { %4195 = vmatprep.mubr.bf16.mxu0 %v3464_v57 }
 0x31a   :  { %4196 = vmatmul.mubr.bf16.vlgmr.msra.gmra.mxu0 %v3463_v27 }
 0x31b   :  { %5536 = vmatpush3.bf16.msra.mxu0 %v6303_v49  ;;  %4276 = vmatprep.mubr.bf16.mxu0 %v3464_v57  ;;  %v6386_v57 = vld [vmem:[%s6978_s7 + $0x114] ss:$8 sps:$4 sm:$0xff]   ;;  %v6384_v49 = vld [vmem:[%s6978_s7 + $0x110] ss:$8 sps:$4 sm:$0xff]  }
 0x31c   :  { %5537 = vmatprep.subr.bf16.mxu0 %v6304_v58  ;;  %v6387_v58 = vld [vmem:[%s6978_s7 + $0x100] ss:$8 sps:$4 sm:$0xff]  }
 0x31f   :  { %5538 = vmatpush3.bf16.msra.mxu0 %v6305_v24 }
 0x320   :  { %5539 = vmatprep.subr.bf16.mxu0 %v6306_v16 }
 0x323   :  { %5540 = vmatpush3.bf16.msra.mxu0 %v6307_v51 }
 0x324   :  { %5541 = vmatprep.subr.bf16.mxu0 %v6308_v34 }
 0x327   :  { %5542 = vmatpush3.bf16.msra.mxu0 %v6309_v61  ;;  %v3593_v61 = vld [vmem:[%s6977_s6] sm:$0x7] }
 0x328   :  { %5543 = vmatprep.subr.bf16.mxu0 %v6310_v46  ;;  %v3598_v46 = vrot.slane %v3593_v61, %v6700_v31  ;;  %v3602_v62 = vrot.slane %v3593_v61, %v6708_v36  ;;  %v3606_v9 = vrot.slane %v3593_v61, %v6728_v12  ;;  %v6392_v12 = vld [vmem:[%s6980_s9 + $0x70] sm:$0xff]  }
 0x32b   :  { %5544 = vmatpush3.bf16.msra.mxu0 %v6311_v0 }
 0x32c   :  { %5545 = vmatprep.subr.bf16.mxu0 %v6312_v28 }
 0x32f   :  { %5546 = vmatpush3.bf16.msra.mxu0 %v6313_v3 }
 0x330   :  { %5547 = vmatprep.subr.bf16.mxu0 %v6314_v4 }
 0x333   :  { %5548 = vmatpush3.bf16.msra.mxu0 %v6315_v6 }
 0x334   :  { %5549 = vmatprep.subr.bf16.mxu0 %v6316_v40 }
 0x337   :  { %5550 = vmatpush3.bf16.msra.mxu0 %v6317_v41 }
 0x338   :  { %4631 = vmatprep.subr.bf16.mxu0 %v6368_v35  ;;  %v6402_v35 = vld [vmem:[%s6980_s9 + $0x48] sm:$0xff]  }
 0x33a   :  { %4277 = vmatmul.mubr.bf16.vlgmr.msra.gmra.mxu0 %v3463_v27  ;;  %v6389_v27 = vld [vmem:[%s6978_s7 + $0x104] ss:$8 sps:$4 sm:$0xff]  }
 0x33b   :  { %4663 = vmatprep.mubr.bf16.mxu0 %v6546_v13  ;;  %v6342_v13 = vld [vmem:[%s6978_s7 + $0xf0] ss:$8 sps:$4 sm:$0xff]   ;;  %4632 = vmatpush1.bf16.msra.mxu0 %v6366_v39  ;;  %v6403_v39 = vld [vmem:[%s6980_s9 + $0x8] sm:$0xff]  }
 0x33c   :  { %4607 = vmatpush2.bf16.msra.mxu1 %v6342_v13  ;;  %4633 = vmatprep.subr.bf16.mxu0 %v6371_v15  ;;  %v6404_v15 = vld [vmem:[%s6980_s9 + $0x40] sm:$0xff]  }
 0x33d   :  { %4608 = vmatprep.subr.bf16.mxu1 %v6347_v18 }
 0x33f   :  { %4634 = vmatpush1.bf16.msra.mxu0 %v6369_v43  ;;  %v6405_v43 = vld [vmem:[%s6980_s9] sm:$0xff]  }
 0x340   :  { %4609 = vmatpush2.bf16.msra.mxu1 %v6345_v19  ;;  %4635 = vmatprep.subr.bf16.mxu0 %v6374_v44 }
 0x341   :  { %4610 = vmatprep.subr.bf16.mxu1 %v6350_v20 }
 0x343   :  { %4636 = vmatpush1.bf16.msra.mxu0 %v6372_v48 }
 0x344   :  { %4611 = vmatpush2.bf16.msra.mxu1 %v6348_v21  ;;  %4637 = vmatprep.subr.bf16.mxu0 %v6377_v50  ;;  %v6390_v21 = vld [vmem:[%s6980_s9 + $0x78] sm:$0xff]  }
 0x345   :  { %4612 = vmatprep.subr.bf16.mxu1 %v6353_v7  ;;  %v6391_v7 = vld [vmem:[%s6980_s9 + $0x38] sm:$0xff]  }
 0x347   :  { %4638 = vmatpush1.bf16.msra.mxu0 %v6375_v52 }
 0x348   :  { %4613 = vmatpush2.bf16.msra.mxu1 %v6351_v22  ;;  %4639 = vmatprep.subr.bf16.mxu0 %v6380_v53  ;;  %v6393_v22 = vld [vmem:[%s6980_s9 + $0x30] sm:$0xff]   ;;  %v4338_v53 = vld [vmem:[#allocation10] sm:$0x3] }
 0x349   :  { %4614 = vmatprep.subr.bf16.mxu1 %v6356_v23  ;;  %v6394_v23 = vld [vmem:[%s6980_s9 + $0x68] sm:$0xff]  }
 0x34b   :  { %4640 = vmatpush1.bf16.msra.mxu0 %v6378_v54  ;;  %v4343_v54 = vrot.slane %v4338_v53, %v6700_v31  ;;  %v5428_v31 = vld [vmem:[%s6981_s10] ss:$0 sm:$0xff] }
 0x34c   :  { %4615 = vmatpush2.bf16.msra.mxu1 %v6354_v25  ;;  %4641 = vmatprep.subr.bf16.mxu0 %v6383_v55  ;;  %v6395_v25 = vld [vmem:[%s6980_s9 + $0x28] sm:$0xff]   ;;  %v4347_v55 = vrot.slane %v4338_v53, %v6708_v36 }
 0x34d   :  { %4616 = vmatprep.subr.bf16.mxu1 %v6359_v26  ;;  %v6396_v26 = vld [vmem:[%s6980_s9 + $0x60] sm:$0xff]  }
 0x34f   :  { %4642 = vmatpush1.bf16.msra.mxu0 %v6381_v56 }
 0x350   :  { %4617 = vmatpush2.bf16.msra.mxu1 %v6357_v29  ;;  %4643 = vmatprep.subr.bf16.mxu0 %v6386_v57  ;;  %v6397_v29 = vld [vmem:[%s6980_s9 + $0x20] sm:$0xff]  }
 0x351   :  { %4618 = vmatprep.subr.bf16.mxu1 %v6362_v30  ;;  %v6398_v30 = vld [vmem:[%s6980_s9 + $0x58] sm:$0xff]  }
 0x353   :  { %4644 = vmatpush1.bf16.msra.mxu0 %v6384_v49 }
 0x354   :  { %4619 = vmatpush2.bf16.msra.mxu1 %v6360_v37  ;;  %4645 = vmatprep.subr.bf16.mxu0 %v6389_v27  ;;  %v6399_v37 = vld [vmem:[%s6980_s9 + $0x18] sm:$0xff]  }
 0x355   :  { %4620 = vmatprep.subr.bf16.mxu1 %v6365_v38  ;;  %v6400_v38 = vld [vmem:[%s6980_s9 + $0x50] sm:$0xff]  }
 0x357   :  { %4646 = vmatpush1.bf16.msra.mxu0 %v6387_v58 }
 0x358   :  { %4621 = vmatpush2.bf16.msra.mxu1 %v6363_v47  ;;  %5557 = vmatprep.subr.bf16.mxu0 %v6390_v21  ;;  %v6401_v47 = vld [vmem:[%s6980_s9 + $0x10] sm:$0xff]  }
 0x398   :  { %v4156_v24 = vpop.f32.mrf.mxu1 }
 0x399   :  { %v4157_v63 = vadd.f32 %v4156_v24, %v3598_v46 }
 0x39a   :  { %v4158_v16 = vpop.f32.mrf.mxu1 }
 0x39b   :  { %v4159_v28 = vadd.f32 %v4158_v16, %v3602_v62 }
 0x39c   :  { %v4160_v59 = vpop.f32.mrf.mxu1 }
 0x39e   :  { %v4161_v45 = vpop.f32.mrf.mxu1 }
 0x3b8   :  { %v5529_v51 = vpop.f32.mrf.mxu1 }
 0x3ba   :  { %v5530_v60 = vpop.f32.mrf.mxu1 }
 0x3bb   :  { %v5531_v34 = vadd.f32 %v5530_v60, %v5529_v51 }
 0x3bc   :  { %v5532_v32 = vpop.f32.mrf.mxu1 }
 0x3bd   :  { %v4239_v11 = vadd.f32 %v5531_v34, %v3606_v9 }
 0x3be   :  { %v5533_v42 = vpop.f32.mrf.mxu1 }
 0x3da   :  { %v4197_v0 = vpop.f32.mrf.mxu0 }
 0x3db   :  { %v4198_v1 = vadd.f32 %v4197_v0, %v4157_v63 }
 0x3dc   :  { %v4199_v2 = vpop.f32.mrf.mxu0 }
 0x3dd   :  { %v4200_v3 = vadd.f32 %v4199_v2, %v4159_v28  ;;  %v4284_v4 = vmax.f32 %v4198_v1, 0.0 }
 0x3de   :  { %v4201_v5 = vpop.f32.mrf.mxu0 }
 0x3df   :  { %v4285_v6 = vmax.f32 %v4200_v3, 0.0  ;;  %v4287_v8 = vpack.c.bf16 %v4284_v4, %v4284_v4 }
 0x3e0   :  { %v4202_v40 = vpop.f32.mrf.mxu0 }
 0x3e1   :  { %v4288_v41 = vpack.c.bf16 %v4285_v6, %v4285_v6 }
 0x3e3   :  { %4622 = vmatprep.mubr.bf16.mxu1 %v4288_v41 }
 0x3e4   :  { %4623 = vmatmul.mubr.bf16.vlgmr.msra.gmra.mxu1 %v4287_v8 }
 0x3fa   :  { %v5551_v10 = vpop.f32.mrf.mxu0 }
 0x3fc   :  { %v5552_v33 = vpop.f32.mrf.mxu0 }
 0x3fd   :  { %v5553_v14 = vadd.f32 %v5552_v33, %v5551_v10 }
 0x3fe   :  { %v5554_v17 = vpop.f32.mrf.mxu0 }
 0x3ff   :  { %v4279_v13 = vadd.f32 %v5553_v14, %v4239_v11 }
 0x400   :  { %v5555_v18 = vpop.f32.mrf.mxu0 }
 0x401   :  { %v4286_v19 = vmax.f32 %v4279_v13, 0.0 }
 0x403   :  { %v4289_v20 = vpack.c.bf16 %v4286_v19, %v4286_v19 }
 0x405   :  { %4664 = vmatmul.mubr.bf16.vlgmr.msra.gmra.mxu0 %v4289_v20 }
 0x406   :  { %5558 = vmatpush3.bf16.msra.mxu0 %v6391_v7 }
 0x407   :  { %5559 = vmatprep.subr.bf16.mxu0 %v6392_v12 }
 0x40a   :  { %5560 = vmatpush3.bf16.msra.mxu0 %v6393_v22 }
 0x40b   :  { %5561 = vmatprep.subr.bf16.mxu0 %v6394_v23 }
 0x40e   :  { %5562 = vmatpush3.bf16.msra.mxu0 %v6395_v25 }
 0x40f   :  { %5563 = vmatprep.subr.bf16.mxu0 %v6396_v26 }
 0x412   :  { %5564 = vmatpush3.bf16.msra.mxu0 %v6397_v29 }
 0x413   :  { %5565 = vmatprep.subr.bf16.mxu0 %v6398_v30 }
 0x416   :  { %5566 = vmatpush3.bf16.msra.mxu0 %v6399_v37 }
 0x417   :  { %5567 = vmatprep.subr.bf16.mxu0 %v6400_v38 }
 0x41a   :  { %5568 = vmatpush3.bf16.msra.mxu0 %v6401_v47 }
 0x41b   :  { %5569 = vmatprep.subr.bf16.mxu0 %v6402_v35 }
 0x41e   :  { %5570 = vmatpush3.bf16.msra.mxu0 %v6403_v39 }
 0x41f   :  { %5571 = vmatprep.subr.bf16.mxu0 %v6404_v15 }
 0x422   :  { %5572 = vmatpush3.bf16.msra.mxu0 %v6405_v43 }
 0x4a4   :  { %v4624_v44 = vpop.f32.mrf.mxu1 }
 0x4a5   :  { %v4625_v56 = vadd.f32 %v4624_v44, %v4343_v54 }
 0x4a6   :  { %v4626_v48 = vpop.f32.mrf.mxu1 }
 0x4a7   :  { %v4627_v49 = vadd.f32 %v4626_v48, %v4347_v55 }
 0x4a8   :  { %v4628_v50 = vpop.f32.mrf.mxu1 }
 0x4aa   :  { %v4629_v52 = vpop.f32.mrf.mxu1 }
 0x4c5   :  { %v4665_v57 = vpop.f32.mrf.mxu0 }
 0x4c6   :  { %v4666_v27 = vadd.f32 %v4665_v57, %v4625_v56 }
 0x4c7   :  { %v4667_v58 = vpop.f32.mrf.mxu0 }
 0x4c8   :  { %v4668_v24 = vadd.f32 %v4667_v58, %v4627_v49  ;;  %v4672_v16 = vmax.f32 %v4666_v27, 0.0 }
 0x4c9   :  { %v4669_v59 = vpop.f32.mrf.mxu0 }
 0x4ca   :  { %v4673_v45 = vmax.f32 %v4668_v24, 0.0  ;;  %v4674_v34 = vpack.c.bf16 %v4672_v16, %v4672_v16 }
 0x4cb   :  { %v4670_v51 = vpop.f32.mrf.mxu0 }
 0x4cc   :  { %v4675_v60 = vpack.c.bf16 %v4673_v45, %v4673_v45 }
 0x4ce   :  { %4843 = vmatprep.mubr.bf16.mxu0 %v4675_v60 }
 0x4cf   :  { %4844 = vmatmul.mubr.bf16.vlgmr.msra.gmra.mxu0 %v4674_v34 }
 0x58f   :  { %v5573_v32 = vpop.f32.mrf.mxu0 }
 0x591   :  { %v5574_v36 = vpop.f32.mrf.mxu0 }
 0x592   :  { %v5575_v42 = vadd.f32 %v5574_v36, %v5573_v32 }
 0x593   :  { %v5576_v61 = vpop.f32.mrf.mxu0 }
 0x594   :  { %v4846_v46 = vadd.f32 %v5575_v42, %v5428_v31 }
 0x595   :  { %v5577_v62 = vpop.f32.mrf.mxu0 }
 0x596   :  { %4851 = vst [vmem:[#allocation11] sm:$0xff] %v4846_v46 }
 0x597   :  { %6518 = shalt.err (!%p6515_p1)
}
 0x598   :  { %4861 = dma.vmem_to_hbm [thread:$0]  %s4859_s0, 128, %s6982_s11, [#allocation4]  }
 0x599   :  { %6533 = dma.done.wait [#allocation4], 128  }
 0x59a   :  { %6534 = vsyncadd [#allocation4], 4294967168 }
 0x59b   :  { %4865 = vsyncpa [#allocation3], 1 }
 0x59c   :  { %4866 = vsyncpa [#allocation6], 1 }
 0x59d   :  { %4867 = vsyncpa [#allocation9], 1 }
 0x59e   :  { %4868 = vsyncpa [#allocation4], 1 }

</bundles_post_ra>
